<compile_context>
chip_gen: v6e
topology: v6e:2x2x1
jax: 0.10.0
libtpu: 0.0.40
codegen_flags: <defaults>
</compile_context>

<pallas_src>
import math

import jax
import jax.numpy as jnp
import numpy as np
from jax.experimental import pallas as pl
from jax.experimental.pallas import tpu as pltpu


def _silu(v):
    # reciprocal goes to the EUP slot (free relative to a VPU divide sequence)
    return v * pl.reciprocal(1.0 + jnp.exp(-v), approx=True)


def _silu_ref(v):
    return v * (1.0 / (1.0 + jnp.exp(-v)))


def _softplus(v):
    return jnp.where(v > 20.0, v, jnp.log1p(jnp.exp(jnp.minimum(v, 20.0))))


# ----------------------------------------------------------------------------- kernel
def _mamba_block_kernel(h_ref, w_in_ref, w_delta_ref, w_bc_ref, small_ref, w_out_ref,
                        out_ref, conv_ref, ys_ref):
    Bb, L, d_model = h_ref.shape
    d_in = w_delta_ref.shape[0]
    N = w_bc_ref.shape[0] // 2
    K = small_ref.shape[0] - N - 3
    pad = conv_ref.shape[1] - L            # sublane-aligned causal left pad (>= K-1)

    # ---- packed per-channel params (static row slices) ------------------------------
    conv_b = small_ref[K:K + 1, :]          # [1, d_in]
    b_dt = small_ref[K + 1:K + 2, :]        # [1, d_in]
    d_vec = small_ref[K + 2:K + 3, :]       # [1, d_in]
    A = small_ref[K + 3:K + 3 + N, :]       # [N, d_in] == -exp(A_log), folded host-side

    h2 = h_ref[...].reshape(Bb * L, d_model)

    # ---- fused proj_1 | proj_2: one lane-dense MXU push ------------------------------
    xzg = jnp.dot(h2, w_in_ref[...], preferred_element_type=jnp.float32)   # [Bb*L, 2*d_in]
    xz = xzg[:, :d_in]
    gate = _silu(xzg[:, d_in:])

    # ---- depthwise causal conv: padded scratch + static shifted slices (no matmul) ---
    conv_ref[:, :pad, :] = jnp.zeros((Bb, pad, d_in), jnp.float32)         # aligned store
    conv_ref[:, pad:, :] = xz.reshape(Bb, L, d_in)                         # aligned store
    acc = jnp.zeros((Bb, L, d_in), jnp.float32)
    for k in range(K):                                                     # static unroll
        off = pad - (K - 1) + k
        acc = acc + conv_ref[:, off:off + L, :] * small_ref[k:k + 1, :]
    x2 = _silu(acc.reshape(Bb * L, d_in) + conv_b)                         # [Bb*L, d_in]

    # ---- input-dependent SSM parameters ----------------------------------------------
    delta = _softplus(jnp.dot(x2, w_delta_ref[...],
                              preferred_element_type=jnp.float32) + b_dt)  # [Bb*L, d_in]
    u = delta * x2                                                         # hoisted

    # B and C in one matmul, produced directly transposed as [2N, Bb*L] so the scan
    # reads time columns without transposing activations.
    bct = jax.lax.dot_general(w_bc_ref[...], x2, (((1,), (1,)), ((), ())),
                              preferred_element_type=jnp.float32)          # [2N, Bb*L]

    # ---- hoisted discretization / input injection (independent of the scan carry) ----
    lane_ids = jax.lax.broadcasted_iota(jnp.int32, (2 * N, Bb * L), 1)
    dA, dBu, c_cols = [], [], []
    for i in range(Bb * L):                                                # static unroll
        col = jnp.sum(jnp.where(lane_ids == i, bct, 0.0),
                      axis=1, keepdims=True)                               # [2N, 1]
        delta_i = delta[i:i + 1, :]                                        # static row slice
        dA.append(jnp.exp(delta_i * A))                                    # [N, d_in] (EUP)
        dBu.append(col[0:N, :] * u[i:i + 1, :])                            # [N, d_in]
        c_cols.append(col[N:2 * N, :])                                     # [N, 1]

    # ---- selective scan: carry chain is VPU mul/add only -----------------------------
    for b in range(Bb):                                                    # independent chains
        hstate = jnp.zeros((N, d_in), jnp.float32)
        for t in range(L):                                                 # static unroll
            i = b * L + t
            hstate = dA[i] * hstate + dBu[i]
            # sublane (XLU) reduce + row store: both off the carry chain
            ys_ref[i:i + 1, :] = jnp.sum(c_cols[i] * hstate, axis=0, keepdims=True)

    # ---- skip connection, gating, output projection -----------------------------------
    y = ys_ref[...] + d_vec * x2                                           # [Bb*L, d_in]
    out = jnp.dot(y * gate, w_out_ref[...], preferred_element_type=jnp.float32)
    # TODO(synk): with d_model=32 the final store is lane-masked; fold L into lanes if
    # these toy output dims ever matter for throughput.
    out_ref[...] = out.reshape(Bb, L, d_model).astype(out_ref.dtype)


# ----------------------------------------------------------------------------- wrapper
def _pick_batch_block(B):
    """One batch per grid step on 2-TensorCore chips (v4/v5p/v7x) so the 'parallel' axis
    maps onto both cores; fold the whole batch into one grid step on single-TC v5e/v6e."""
    try:
        kind = jax.devices()[0].device_kind.lower()
    except Exception:
        return B
    if ("v4" in kind) or ("v5p" in kind) or ("v7" in kind) or ("7x" in kind):
        return 1 if B > 1 else B
    return B


def mamba_block_pallas(hidden_states, p, *, batch_block=None):
    B, L, d_model = hidden_states.shape
    N, d_inner = p["a_log"].shape
    K = p["conv_w"].shape[0]

    if batch_block is None:
        batch_block = _pick_batch_block(B)
    assert B % batch_block == 0
    Bb = batch_block

    # ---- host-side weight prep: fusions & folds --------------------------------------
    w_in = jnp.concatenate([p["w1_t"], p["w2_t"]], axis=1)            # [d_model, 2*d_inner]
    w_delta_full = p["w_delta_t"] @ p["w_dt_t"]                       # [d_inner, d_inner]
    w_bc = jnp.concatenate([p["w_b_t"].T, p["w_c_t"].T], axis=0)      # [2N, d_inner]
    a_neg = -jnp.exp(p["a_log"])                                      # [N, d_inner]
    small = jnp.concatenate([p["conv_w"], p["conv_b"], p["b_dt"], p["d_vec"], a_neg],
                            axis=0)                                   # [K+3+N, d_inner]

    pad = max(8, ((K - 1 + 7) // 8) * 8)      # sublane-aligned causal left padding

    def _full(arr):
        return pl.BlockSpec(arr.shape, lambda g: (0,) * arr.ndim)

    in_specs = [
        pl.BlockSpec((Bb, L, d_model), lambda g: (g, 0, 0)),
        _full(w_in), _full(w_delta_full), _full(w_bc), _full(small), _full(p["w_out_t"]),
    ]
    out_spec = pl.BlockSpec((Bb, L, d_model), lambda g: (g, 0, 0))

    return pl.pallas_call(
        _mamba_block_kernel,
        out_shape=jax.ShapeDtypeStruct((B, L, d_model), jnp.float32),
        grid_spec=pltpu.PrefetchScalarGridSpec(
            num_scalar_prefetch=0,
            grid=(B // Bb,),
            in_specs=in_specs,
            out_specs=out_spec,
            scratch_shapes=[
                pltpu.VMEM((Bb, pad + L, d_inner), jnp.float32),   # causal-conv pad buffer
                pltpu.VMEM((Bb * L, d_inner), jnp.float32),        # per-step y rows
            ],
        ),
        compiler_params=pltpu.CompilerParams(
            dimension_semantics=("parallel",),
            vmem_limit_bytes=32 * 1024 * 1024,
        ),
    )(hidden_states, w_in, w_delta_full, w_bc, small, p["w_out_t"])


# ----------------------------------------------------------------------------- reference
def mamba_block_ref(h, p):
    B, L, _ = h.shape
    K = p["conv_w"].shape[0]
    N, d_in = p["a_log"].shape

    x = jnp.einsum("bld,de->ble", h, p["w1_t"])
    gate = _silu_ref(jnp.einsum("bld,de->ble", h, p["w2_t"]))

    xp = jnp.pad(x, ((0, 0), (K - 1, 0), (0, 0)))
    acc = jnp.zeros_like(x)
    for k in range(K):
        acc = acc + xp[:, k:k + L, :] * p["conv_w"][k][None, None, :]
    acc = acc + p["conv_b"]
    x = _silu_ref(acc)

    delta = _softplus(jnp.einsum("ble,er->blr", x, p["w_delta_t"]) @ p["w_dt_t"]
                      + p["b_dt"])
    Bm = jnp.einsum("ble,en->bln", x, p["w_b_t"])
    Cm = jnp.einsum("ble,en->bln", x, p["w_c_t"])
    A = -jnp.exp(p["a_log"])                                          # [N, d_in]

    hs = jnp.zeros((B, N, d_in), jnp.float32)
    ys = []
    for t in range(L):
        dA = jnp.exp(delta[:, t][:, None, :] * A[None])               # [B, N, d_in]
        u = delta[:, t] * x[:, t]                                     # [B, d_in]
        dBu = Bm[:, t][:, :, None] * u[:, None, :]                    # [B, N, d_in]
        hs = dA * hs + dBu
        ys.append(jnp.einsum("bn,bne->be", Cm[:, t], hs))
    y = jnp.stack(ys, axis=1) + p["d_vec"] * x
    return jnp.einsum("ble,ed->bld", y * gate, p["w_out_t"])


# ----------------------------------------------------------------------------- main
if __name__ == "__main__":
    # MambaConfig: d_model=32, projection_size=2, conv_ker=4, conv_bias=True, bias=False
    d_model = 32
    projection_size = 2
    conv_ker = 4
    d_inner = d_model * projection_size          # == conv_size == proj_1 output width
    d_state = 8
    dt_rank = max(1, math.ceil(d_model / 16))    # = 2
    B, L = 2, 8

    key = jax.random.PRNGKey(0)
    keys = jax.random.split(key, 12)

    def _uniform(k, shape, fan_in):
        bound = 1.0 / math.sqrt(fan_in)
        return jax.random.uniform(k, shape, jnp.float32, -bound, bound)

    params = dict(
        w1_t=_uniform(keys[0], (d_model, d_inner), d_model),        # proj_1.weight.T
        w2_t=_uniform(keys[1], (d_model, d_inner), d_model),        # proj_2.weight.T
        conv_w=_uniform(keys[2], (conv_ker, d_inner), conv_ker),    # conv.weight[:,0,:].T
        conv_b=_uniform(keys[3], (1, d_inner), conv_ker),           # conv.bias
        w_delta_t=_uniform(keys[4], (d_inner, dt_rank), d_inner),   # x_proj (delta).T
        w_b_t=_uniform(keys[5], (d_inner, d_state), d_inner),       # x_proj (B).T
        w_c_t=_uniform(keys[6], (d_inner, d_state), d_inner),       # x_proj (C).T
        w_dt_t=_uniform(keys[7], (dt_rank, d_inner), dt_rank),      # dt_proj.weight.T
        b_dt=_uniform(keys[8], (1, d_inner), dt_rank),              # dt_proj.bias
        a_log=jnp.log(jnp.broadcast_to(
            jnp.arange(1, d_state + 1, dtype=jnp.float32)[:, None],
            (d_state, d_inner))),                                   # A_log, stored [N, d_inner]
        d_vec=jnp.ones((1, d_inner), jnp.float32),                  # D
        w_out_t=_uniform(keys[9], (d_inner, d_model), d_inner),     # out_proj.weight.T
    )

    hidden_states = jax.random.normal(keys[10], (B, L, d_model), jnp.float32)

    out = mamba_block_pallas(hidden_states, params)
    out = jax.block_until_ready(out)

    ref = mamba_block_ref(hidden_states, params)
    np.testing.assert_allclose(np.asarray(out), np.asarray(ref), rtol=5e-2, atol=5e-2)

    print("KERNEL_OK")
</pallas_src>

<mosaic_0001>
module attributes {stable_mosaic.version = 11 : i64} {
  func.func @_mamba_block_kernel(%arg0: i32, %arg1: memref<2x8x32xf32, #tpu.memory_space<vmem>>, %arg2: memref<32x128xf32, #tpu.memory_space<vmem>>, %arg3: memref<64x64xf32, #tpu.memory_space<vmem>>, %arg4: memref<16x64xf32, #tpu.memory_space<vmem>>, %arg5: memref<15x64xf32, #tpu.memory_space<vmem>>, %arg6: memref<64x32xf32, #tpu.memory_space<vmem>>, %arg7: memref<2x8x32xf32, #tpu.memory_space<vmem>>, %arg8: memref<2x16x64xf32, #tpu.memory_space<vmem>>, %arg9: memref<16x64xf32, #tpu.memory_space<vmem>>) attributes {dimension_semantics = [#tpu.dimension_semantics<parallel>], iteration_bounds = array<i64: 1>, scalar_prefetch = 0 : i64, scratch_operands = 2 : i64, tpu.core_type = #tpu.core_type<tc>, window_params = [{transform_indices = @transform_0, window_bounds = array<i64: 2, 8, 32>}, {pipeline_mode = #tpu.pipeline_mode<synchronous>, transform_indices = @transform_1, window_bounds = array<i64: 32, 128>}, {pipeline_mode = #tpu.pipeline_mode<synchronous>, transform_indices = @transform_2, window_bounds = array<i64: 64, 64>}, {pipeline_mode = #tpu.pipeline_mode<synchronous>, transform_indices = @transform_3, window_bounds = array<i64: 16, 64>}, {pipeline_mode = #tpu.pipeline_mode<synchronous>, transform_indices = @transform_4, window_bounds = array<i64: 15, 64>}, {pipeline_mode = #tpu.pipeline_mode<synchronous>, transform_indices = @transform_5, window_bounds = array<i64: 64, 32>}, {transform_indices = @transform_6, window_bounds = array<i64: 2, 8, 32>}]} {
    %c4 = arith.constant 4 : index
    %c0 = arith.constant 0 : index
    %0 = vector.load %arg5[%c4, %c0] : memref<15x64xf32, #tpu.memory_space<vmem>>, vector<1x64xf32>
    %c5 = arith.constant 5 : index
    %c0_0 = arith.constant 0 : index
    %1 = vector.load %arg5[%c5, %c0_0] : memref<15x64xf32, #tpu.memory_space<vmem>>, vector<1x64xf32>
    %c6 = arith.constant 6 : index
    %c0_1 = arith.constant 0 : index
    %2 = vector.load %arg5[%c6, %c0_1] : memref<15x64xf32, #tpu.memory_space<vmem>>, vector<1x64xf32>
    %c7 = arith.constant 7 : index
    %c0_2 = arith.constant 0 : index
    %3 = vector.load %arg5[%c7, %c0_2] : memref<15x64xf32, #tpu.memory_space<vmem>>, vector<8x64xf32>
    %c0_3 = arith.constant 0 : index
    %c0_4 = arith.constant 0 : index
    %c0_5 = arith.constant 0 : index
    %4 = vector.load %arg1[%c0_3, %c0_4, %c0_5] : memref<2x8x32xf32, #tpu.memory_space<vmem>>, vector<2x8x32xf32>
    %5 = vector.shape_cast %4 : vector<2x8x32xf32> to vector<16x32xf32>
    %c0_6 = arith.constant 0 : index
    %c0_7 = arith.constant 0 : index
    %6 = vector.load %arg2[%c0_6, %c0_7] : memref<32x128xf32, #tpu.memory_space<vmem>>, vector<32x128xf32>
    %cst = arith.constant dense<0.000000e+00> : vector<16x128xf32>
    %7 = tpu.matmul %5, %6, %cst {dimension_numbers = #tpu.dot_dimension_numbers<[1], [0], [0], [1], [0, 0, 1, 1], [], []>} : vector<16x32xf32>, vector<32x128xf32>, vector<16x128xf32> -> vector<16x128xf32>
    %8 = vector.extract_strided_slice %7 {offsets = [0, 0], sizes = [16, 64], strides = [1, 1]} : vector<16x128xf32> to vector<16x64xf32>
    %9 = vector.extract_strided_slice %7 {offsets = [0, 64], sizes = [16, 64], strides = [1, 1]} : vector<16x128xf32> to vector<16x64xf32>
    %cst_8 = arith.constant 0.000000e+00 : f32
    %10 = vector.broadcast %cst_8 : f32 to vector<16x64xf32>
    %11 = arith.subf %10, %9 : vector<16x64xf32>
    %12 = math.exp %11 : vector<16x64xf32>
    %cst_9 = arith.constant 1.000000e+00 : f32
    %13 = vector.broadcast %cst_9 : f32 to vector<16x64xf32>
    %14 = arith.addf %13, %12 : vector<16x64xf32>
    %15 = tpu.reciprocal %14 {approx = true} : vector<16x64xf32> -> vector<16x64xf32>
    %16 = arith.mulf %9, %15 : vector<16x64xf32>
    %cst_10 = arith.constant 0.000000e+00 : f32
    %17 = vector.broadcast %cst_10 : f32 to vector<2x8x64xf32>
    %c0_11 = arith.constant 0 : index
    %c0_12 = arith.constant 0 : index
    %c0_13 = arith.constant 0 : index
    %18 = vector.load %arg8[%c0_11, %c0_12, %c0_13] : memref<2x16x64xf32, #tpu.memory_space<vmem>>, vector<2x8x64xf32>
    tpu.vector_store %arg8[%c0_11, %c0_12, %c0_13], %17 {strides = array<i32>} : memref<2x16x64xf32, #tpu.memory_space<vmem>>, vector<2x8x64xf32>,
    %19 = vector.shape_cast %8 : vector<16x64xf32> to vector<2x8x64xf32>
    %c0_14 = arith.constant 0 : index
    %c8 = arith.constant 8 : index
    %c0_15 = arith.constant 0 : index
    %20 = vector.load %arg8[%c0_14, %c8, %c0_15] : memref<2x16x64xf32, #tpu.memory_space<vmem>>, vector<2x8x64xf32>
    tpu.vector_store %arg8[%c0_14, %c8, %c0_15], %19 {strides = array<i32>} : memref<2x16x64xf32, #tpu.memory_space<vmem>>, vector<2x8x64xf32>,
    %cst_16 = arith.constant 0.000000e+00 : f32
    %21 = vector.broadcast %cst_16 : f32 to vector<2x8x64xf32>
    %c0_17 = arith.constant 0 : index
    %c5_18 = arith.constant 5 : index
    %c0_19 = arith.constant 0 : index
    %22 = vector.load %arg8[%c0_17, %c5_18, %c0_19] : memref<2x16x64xf32, #tpu.memory_space<vmem>>, vector<2x8x64xf32>
    %c0_20 = arith.constant 0 : index
    %c0_21 = arith.constant 0 : index
    %23 = vector.load %arg5[%c0_20, %c0_21] : memref<15x64xf32, #tpu.memory_space<vmem>>, vector<1x64xf32>
    %24 = vector.shape_cast %23 : vector<1x64xf32> to vector<1x1x64xf32>
    %25 = vector.broadcast %24 : vector<1x1x64xf32> to vector<2x8x64xf32>
    %26 = arith.mulf %22, %25 : vector<2x8x64xf32>
    %27 = arith.addf %21, %26 : vector<2x8x64xf32>
    %c0_22 = arith.constant 0 : index
    %c6_23 = arith.constant 6 : index
    %c0_24 = arith.constant 0 : index
    %28 = vector.load %arg8[%c0_22, %c6_23, %c0_24] : memref<2x16x64xf32, #tpu.memory_space<vmem>>, vector<2x8x64xf32>
    %c1 = arith.constant 1 : index
    %c0_25 = arith.constant 0 : index
    %29 = vector.load %arg5[%c1, %c0_25] : memref<15x64xf32, #tpu.memory_space<vmem>>, vector<1x64xf32>
    %30 = vector.shape_cast %29 : vector<1x64xf32> to vector<1x1x64xf32>
    %31 = vector.broadcast %30 : vector<1x1x64xf32> to vector<2x8x64xf32>
    %32 = arith.mulf %28, %31 : vector<2x8x64xf32>
    %33 = arith.addf %27, %32 : vector<2x8x64xf32>
    %c0_26 = arith.constant 0 : index
    %c7_27 = arith.constant 7 : index
    %c0_28 = arith.constant 0 : index
    %34 = vector.load %arg8[%c0_26, %c7_27, %c0_28] : memref<2x16x64xf32, #tpu.memory_space<vmem>>, vector<2x8x64xf32>
    %c2 = arith.constant 2 : index
    %c0_29 = arith.constant 0 : index
    %35 = vector.load %arg5[%c2, %c0_29] : memref<15x64xf32, #tpu.memory_space<vmem>>, vector<1x64xf32>
    %36 = vector.shape_cast %35 : vector<1x64xf32> to vector<1x1x64xf32>
    %37 = vector.broadcast %36 : vector<1x1x64xf32> to vector<2x8x64xf32>
    %38 = arith.mulf %34, %37 : vector<2x8x64xf32>
    %39 = arith.addf %33, %38 : vector<2x8x64xf32>
    %c0_30 = arith.constant 0 : index
    %c8_31 = arith.constant 8 : index
    %c0_32 = arith.constant 0 : index
    %40 = vector.load %arg8[%c0_30, %c8_31, %c0_32] : memref<2x16x64xf32, #tpu.memory_space<vmem>>, vector<2x8x64xf32>
    %c3 = arith.constant 3 : index
    %c0_33 = arith.constant 0 : index
    %41 = vector.load %arg5[%c3, %c0_33] : memref<15x64xf32, #tpu.memory_space<vmem>>, vector<1x64xf32>
    %42 = vector.shape_cast %41 : vector<1x64xf32> to vector<1x1x64xf32>
    %43 = vector.broadcast %42 : vector<1x1x64xf32> to vector<2x8x64xf32>
    %44 = arith.mulf %40, %43 : vector<2x8x64xf32>
    %45 = arith.addf %39, %44 : vector<2x8x64xf32>
    %46 = vector.shape_cast %45 : vector<2x8x64xf32> to vector<16x64xf32>
    %47 = vector.broadcast %0 : vector<1x64xf32> to vector<16x64xf32>
    %48 = arith.addf %46, %47 : vector<16x64xf32>
    %cst_34 = arith.constant 0.000000e+00 : f32
    %49 = vector.broadcast %cst_34 : f32 to vector<16x64xf32>
    %50 = arith.subf %49, %48 : vector<16x64xf32>
    %51 = math.exp %50 : vector<16x64xf32>
    %cst_35 = arith.constant 1.000000e+00 : f32
    %52 = vector.broadcast %cst_35 : f32 to vector<16x64xf32>
    %53 = arith.addf %52, %51 : vector<16x64xf32>
    %54 = tpu.reciprocal %53 {approx = true} : vector<16x64xf32> -> vector<16x64xf32>
    %55 = arith.mulf %48, %54 : vector<16x64xf32>
    %c0_36 = arith.constant 0 : index
    %c0_37 = arith.constant 0 : index
    %56 = vector.load %arg3[%c0_36, %c0_37] : memref<64x64xf32, #tpu.memory_space<vmem>>, vector<64x64xf32>
    %cst_38 = arith.constant dense<0.000000e+00> : vector<16x64xf32>
    %57 = tpu.matmul %55, %56, %cst_38 {dimension_numbers = #tpu.dot_dimension_numbers<[1], [0], [0], [1], [0, 0, 1, 1], [], []>} : vector<16x64xf32>, vector<64x64xf32>, vector<16x64xf32> -> vector<16x64xf32>
    %58 = vector.broadcast %1 : vector<1x64xf32> to vector<16x64xf32>
    %59 = arith.addf %57, %58 : vector<16x64xf32>
    %cst_39 = arith.constant 2.000000e+01 : f32
    %60 = vector.broadcast %cst_39 : f32 to vector<16x64xf32>
    %61 = arith.cmpf ogt, %59, %60 : vector<16x64xf32>
    %cst_40 = arith.constant 2.000000e+01 : f32
    %62 = vector.broadcast %cst_40 : f32 to vector<16x64xf32>
    %63 = arith.minimumf %59, %62 : vector<16x64xf32>
    %64 = math.exp %63 : vector<16x64xf32>
    %65 = math.log1p %64 : vector<16x64xf32>
    %66 = arith.select %61, %59, %65 : vector<16x64xi1>, vector<16x64xf32>
    %67 = arith.mulf %66, %55 : vector<16x64xf32>
    %c0_41 = arith.constant 0 : index
    %c0_42 = arith.constant 0 : index
    %68 = vector.load %arg4[%c0_41, %c0_42] : memref<16x64xf32, #tpu.memory_space<vmem>>, vector<16x64xf32>
    %cst_43 = arith.constant dense<0.000000e+00> : vector<16x16xf32>
    %69 = tpu.matmul %68, %55, %cst_43 {dimension_numbers = #tpu.dot_dimension_numbers<[1], [1], [0], [0], [0, 0, 1, 0], [], []>} : vector<16x64xf32>, vector<16x64xf32>, vector<16x16xf32> -> vector<16x16xf32>
    %70 = tpu.iota {dimensions = array<i32: 1>} : vector<16x16xi32>
    %c0_i32 = arith.constant 0 : i32
    %71 = vector.broadcast %c0_i32 : i32 to vector<16x16xi32>
    %72 = arith.cmpi eq, %70, %71 : vector<16x16xi32>
    %cst_44 = arith.constant 0.000000e+00 : f32
    %73 = vector.broadcast %cst_44 : f32 to vector<16x16xf32>
    %74 = arith.select %72, %69, %73 : vector<16x16xi1>, vector<16x16xf32>
    %cst_45 = arith.constant dense<0.000000e+00> : vector<16xf32>
    %75 = vector.multi_reduction <add>, %74, %cst_45 [1] : vector<16x16xf32> to vector<16xf32>
    %76 = vector.shape_cast %75 : vector<16xf32> to vector<16x1xf32>
    %77 = vector.extract_strided_slice %66 {offsets = [0, 0], sizes = [1, 64], strides = [1, 1]} : vector<16x64xf32> to vector<1x64xf32>
    %78 = vector.broadcast %77 : vector<1x64xf32> to vector<8x64xf32>
    %79 = arith.mulf %78, %3 : vector<8x64xf32>
    %80 = math.exp %79 : vector<8x64xf32>
    %81 = vector.extract_strided_slice %76 {offsets = [0, 0], sizes = [8, 1], strides = [1, 1]} : vector<16x1xf32> to vector<8x1xf32>
    %82 = vector.extract_strided_slice %67 {offsets = [0, 0], sizes = [1, 64], strides = [1, 1]} : vector<16x64xf32> to vector<1x64xf32>
    %83 = vector.broadcast %81 : vector<8x1xf32> to vector<8x64xf32>
    %84 = vector.broadcast %82 : vector<1x64xf32> to vector<8x64xf32>
    %85 = arith.mulf %83, %84 : vector<8x64xf32>
    %86 = vector.extract_strided_slice %76 {offsets = [8, 0], sizes = [8, 1], strides = [1, 1]} : vector<16x1xf32> to vector<8x1xf32>
    %c1_i32 = arith.constant 1 : i32
    %87 = vector.broadcast %c1_i32 : i32 to vector<16x16xi32>
    %88 = arith.cmpi eq, %70, %87 : vector<16x16xi32>
    %cst_46 = arith.constant 0.000000e+00 : f32
    %89 = vector.broadcast %cst_46 : f32 to vector<16x16xf32>
    %90 = arith.select %88, %69, %89 : vector<16x16xi1>, vector<16x16xf32>
    %cst_47 = arith.constant dense<0.000000e+00> : vector<16xf32>
    %91 = vector.multi_reduction <add>, %90, %cst_47 [1] : vector<16x16xf32> to vector<16xf32>
    %92 = vector.shape_cast %91 : vector<16xf32> to vector<16x1xf32>
    %93 = vector.extract_strided_slice %66 {offsets = [1, 0], sizes = [1, 64], strides = [1, 1]} : vector<16x64xf32> to vector<1x64xf32>
    %94 = vector.broadcast %93 : vector<1x64xf32> to vector<8x64xf32>
    %95 = arith.mulf %94, %3 : vector<8x64xf32>
    %96 = math.exp %95 : vector<8x64xf32>
    %97 = vector.extract_strided_slice %92 {offsets = [0, 0], sizes = [8, 1], strides = [1, 1]} : vector<16x1xf32> to vector<8x1xf32>
    %98 = vector.extract_strided_slice %67 {offsets = [1, 0], sizes = [1, 64], strides = [1, 1]} : vector<16x64xf32> to vector<1x64xf32>
    %99 = vector.broadcast %97 : vector<8x1xf32> to vector<8x64xf32>
    %100 = vector.broadcast %98 : vector<1x64xf32> to vector<8x64xf32>
    %101 = arith.mulf %99, %100 : vector<8x64xf32>
    %102 = vector.extract_strided_slice %92 {offsets = [8, 0], sizes = [8, 1], strides = [1, 1]} : vector<16x1xf32> to vector<8x1xf32>
    %c2_i32 = arith.constant 2 : i32
    %103 = vector.broadcast %c2_i32 : i32 to vector<16x16xi32>
    %104 = arith.cmpi eq, %70, %103 : vector<16x16xi32>
    %cst_48 = arith.constant 0.000000e+00 : f32
    %105 = vector.broadcast %cst_48 : f32 to vector<16x16xf32>
    %106 = arith.select %104, %69, %105 : vector<16x16xi1>, vector<16x16xf32>
    %cst_49 = arith.constant dense<0.000000e+00> : vector<16xf32>
    %107 = vector.multi_reduction <add>, %106, %cst_49 [1] : vector<16x16xf32> to vector<16xf32>
    %108 = vector.shape_cast %107 : vector<16xf32> to vector<16x1xf32>
    %109 = vector.extract_strided_slice %66 {offsets = [2, 0], sizes = [1, 64], strides = [1, 1]} : vector<16x64xf32> to vector<1x64xf32>
    %110 = vector.broadcast %109 : vector<1x64xf32> to vector<8x64xf32>
    %111 = arith.mulf %110, %3 : vector<8x64xf32>
    %112 = math.exp %111 : vector<8x64xf32>
    %113 = vector.extract_strided_slice %108 {offsets = [0, 0], sizes = [8, 1], strides = [1, 1]} : vector<16x1xf32> to vector<8x1xf32>
    %114 = vector.extract_strided_slice %67 {offsets = [2, 0], sizes = [1, 64], strides = [1, 1]} : vector<16x64xf32> to vector<1x64xf32>
    %115 = vector.broadcast %113 : vector<8x1xf32> to vector<8x64xf32>
    %116 = vector.broadcast %114 : vector<1x64xf32> to vector<8x64xf32>
    %117 = arith.mulf %115, %116 : vector<8x64xf32>
    %118 = vector.extract_strided_slice %108 {offsets = [8, 0], sizes = [8, 1], strides = [1, 1]} : vector<16x1xf32> to vector<8x1xf32>
    %c3_i32 = arith.constant 3 : i32
    %119 = vector.broadcast %c3_i32 : i32 to vector<16x16xi32>
    %120 = arith.cmpi eq, %70, %119 : vector<16x16xi32>
    %cst_50 = arith.constant 0.000000e+00 : f32
    %121 = vector.broadcast %cst_50 : f32 to vector<16x16xf32>
    %122 = arith.select %120, %69, %121 : vector<16x16xi1>, vector<16x16xf32>
    %cst_51 = arith.constant dense<0.000000e+00> : vector<16xf32>
    %123 = vector.multi_reduction <add>, %122, %cst_51 [1] : vector<16x16xf32> to vector<16xf32>
    %124 = vector.shape_cast %123 : vector<16xf32> to vector<16x1xf32>
    %125 = vector.extract_strided_slice %66 {offsets = [3, 0], sizes = [1, 64], strides = [1, 1]} : vector<16x64xf32> to vector<1x64xf32>
    %126 = vector.broadcast %125 : vector<1x64xf32> to vector<8x64xf32>
    %127 = arith.mulf %126, %3 : vector<8x64xf32>
    %128 = math.exp %127 : vector<8x64xf32>
    %129 = vector.extract_strided_slice %124 {offsets = [0, 0], sizes = [8, 1], strides = [1, 1]} : vector<16x1xf32> to vector<8x1xf32>
    %130 = vector.extract_strided_slice %67 {offsets = [3, 0], sizes = [1, 64], strides = [1, 1]} : vector<16x64xf32> to vector<1x64xf32>
    %131 = vector.broadcast %129 : vector<8x1xf32> to vector<8x64xf32>
    %132 = vector.broadcast %130 : vector<1x64xf32> to vector<8x64xf32>
    %133 = arith.mulf %131, %132 : vector<8x64xf32>
    %134 = vector.extract_strided_slice %124 {offsets = [8, 0], sizes = [8, 1], strides = [1, 1]} : vector<16x1xf32> to vector<8x1xf32>
    %c4_i32 = arith.constant 4 : i32
    %135 = vector.broadcast %c4_i32 : i32 to vector<16x16xi32>
    %136 = arith.cmpi eq, %70, %135 : vector<16x16xi32>
    %cst_52 = arith.constant 0.000000e+00 : f32
    %137 = vector.broadcast %cst_52 : f32 to vector<16x16xf32>
    %138 = arith.select %136, %69, %137 : vector<16x16xi1>, vector<16x16xf32>
    %cst_53 = arith.constant dense<0.000000e+00> : vector<16xf32>
    %139 = vector.multi_reduction <add>, %138, %cst_53 [1] : vector<16x16xf32> to vector<16xf32>
    %140 = vector.shape_cast %139 : vector<16xf32> to vector<16x1xf32>
    %141 = vector.extract_strided_slice %66 {offsets = [4, 0], sizes = [1, 64], strides = [1, 1]} : vector<16x64xf32> to vector<1x64xf32>
    %142 = vector.broadcast %141 : vector<1x64xf32> to vector<8x64xf32>
    %143 = arith.mulf %142, %3 : vector<8x64xf32>
    %144 = math.exp %143 : vector<8x64xf32>
    %145 = vector.extract_strided_slice %140 {offsets = [0, 0], sizes = [8, 1], strides = [1, 1]} : vector<16x1xf32> to vector<8x1xf32>
    %146 = vector.extract_strided_slice %67 {offsets = [4, 0], sizes = [1, 64], strides = [1, 1]} : vector<16x64xf32> to vector<1x64xf32>
    %147 = vector.broadcast %145 : vector<8x1xf32> to vector<8x64xf32>
    %148 = vector.broadcast %146 : vector<1x64xf32> to vector<8x64xf32>
    %149 = arith.mulf %147, %148 : vector<8x64xf32>
    %150 = vector.extract_strided_slice %140 {offsets = [8, 0], sizes = [8, 1], strides = [1, 1]} : vector<16x1xf32> to vector<8x1xf32>
    %c5_i32 = arith.constant 5 : i32
    %151 = vector.broadcast %c5_i32 : i32 to vector<16x16xi32>
    %152 = arith.cmpi eq, %70, %151 : vector<16x16xi32>
    %cst_54 = arith.constant 0.000000e+00 : f32
    %153 = vector.broadcast %cst_54 : f32 to vector<16x16xf32>
    %154 = arith.select %152, %69, %153 : vector<16x16xi1>, vector<16x16xf32>
    %cst_55 = arith.constant dense<0.000000e+00> : vector<16xf32>
    %155 = vector.multi_reduction <add>, %154, %cst_55 [1] : vector<16x16xf32> to vector<16xf32>
    %156 = vector.shape_cast %155 : vector<16xf32> to vector<16x1xf32>
    %157 = vector.extract_strided_slice %66 {offsets = [5, 0], sizes = [1, 64], strides = [1, 1]} : vector<16x64xf32> to vector<1x64xf32>
    %158 = vector.broadcast %157 : vector<1x64xf32> to vector<8x64xf32>
    %159 = arith.mulf %158, %3 : vector<8x64xf32>
    %160 = math.exp %159 : vector<8x64xf32>
    %161 = vector.extract_strided_slice %156 {offsets = [0, 0], sizes = [8, 1], strides = [1, 1]} : vector<16x1xf32> to vector<8x1xf32>
    %162 = vector.extract_strided_slice %67 {offsets = [5, 0], sizes = [1, 64], strides = [1, 1]} : vector<16x64xf32> to vector<1x64xf32>
    %163 = vector.broadcast %161 : vector<8x1xf32> to vector<8x64xf32>
    %164 = vector.broadcast %162 : vector<1x64xf32> to vector<8x64xf32>
    %165 = arith.mulf %163, %164 : vector<8x64xf32>
    %166 = vector.extract_strided_slice %156 {offsets = [8, 0], sizes = [8, 1], strides = [1, 1]} : vector<16x1xf32> to vector<8x1xf32>
    %c6_i32 = arith.constant 6 : i32
    %167 = vector.broadcast %c6_i32 : i32 to vector<16x16xi32>
    %168 = arith.cmpi eq, %70, %167 : vector<16x16xi32>
    %cst_56 = arith.constant 0.000000e+00 : f32
    %169 = vector.broadcast %cst_56 : f32 to vector<16x16xf32>
    %170 = arith.select %168, %69, %169 : vector<16x16xi1>, vector<16x16xf32>
    %cst_57 = arith.constant dense<0.000000e+00> : vector<16xf32>
    %171 = vector.multi_reduction <add>, %170, %cst_57 [1] : vector<16x16xf32> to vector<16xf32>
    %172 = vector.shape_cast %171 : vector<16xf32> to vector<16x1xf32>
    %173 = vector.extract_strided_slice %66 {offsets = [6, 0], sizes = [1, 64], strides = [1, 1]} : vector<16x64xf32> to vector<1x64xf32>
    %174 = vector.broadcast %173 : vector<1x64xf32> to vector<8x64xf32>
    %175 = arith.mulf %174, %3 : vector<8x64xf32>
    %176 = math.exp %175 : vector<8x64xf32>
    %177 = vector.extract_strided_slice %172 {offsets = [0, 0], sizes = [8, 1], strides = [1, 1]} : vector<16x1xf32> to vector<8x1xf32>
    %178 = vector.extract_strided_slice %67 {offsets = [6, 0], sizes = [1, 64], strides = [1, 1]} : vector<16x64xf32> to vector<1x64xf32>
    %179 = vector.broadcast %177 : vector<8x1xf32> to vector<8x64xf32>
    %180 = vector.broadcast %178 : vector<1x64xf32> to vector<8x64xf32>
    %181 = arith.mulf %179, %180 : vector<8x64xf32>
    %182 = vector.extract_strided_slice %172 {offsets = [8, 0], sizes = [8, 1], strides = [1, 1]} : vector<16x1xf32> to vector<8x1xf32>
    %c7_i32 = arith.constant 7 : i32
    %183 = vector.broadcast %c7_i32 : i32 to vector<16x16xi32>
    %184 = arith.cmpi eq, %70, %183 : vector<16x16xi32>
    %cst_58 = arith.constant 0.000000e+00 : f32
    %185 = vector.broadcast %cst_58 : f32 to vector<16x16xf32>
    %186 = arith.select %184, %69, %185 : vector<16x16xi1>, vector<16x16xf32>
    %cst_59 = arith.constant dense<0.000000e+00> : vector<16xf32>
    %187 = vector.multi_reduction <add>, %186, %cst_59 [1] : vector<16x16xf32> to vector<16xf32>
    %188 = vector.shape_cast %187 : vector<16xf32> to vector<16x1xf32>
    %189 = vector.extract_strided_slice %66 {offsets = [7, 0], sizes = [1, 64], strides = [1, 1]} : vector<16x64xf32> to vector<1x64xf32>
    %190 = vector.broadcast %189 : vector<1x64xf32> to vector<8x64xf32>
    %191 = arith.mulf %190, %3 : vector<8x64xf32>
    %192 = math.exp %191 : vector<8x64xf32>
    %193 = vector.extract_strided_slice %188 {offsets = [0, 0], sizes = [8, 1], strides = [1, 1]} : vector<16x1xf32> to vector<8x1xf32>
    %194 = vector.extract_strided_slice %67 {offsets = [7, 0], sizes = [1, 64], strides = [1, 1]} : vector<16x64xf32> to vector<1x64xf32>
    %195 = vector.broadcast %193 : vector<8x1xf32> to vector<8x64xf32>
    %196 = vector.broadcast %194 : vector<1x64xf32> to vector<8x64xf32>
    %197 = arith.mulf %195, %196 : vector<8x64xf32>
    %198 = vector.extract_strided_slice %188 {offsets = [8, 0], sizes = [8, 1], strides = [1, 1]} : vector<16x1xf32> to vector<8x1xf32>
    %c8_i32 = arith.constant 8 : i32
    %199 = vector.broadcast %c8_i32 : i32 to vector<16x16xi32>
    %200 = arith.cmpi eq, %70, %199 : vector<16x16xi32>
    %cst_60 = arith.constant 0.000000e+00 : f32
    %201 = vector.broadcast %cst_60 : f32 to vector<16x16xf32>
    %202 = arith.select %200, %69, %201 : vector<16x16xi1>, vector<16x16xf32>
    %cst_61 = arith.constant dense<0.000000e+00> : vector<16xf32>
    %203 = vector.multi_reduction <add>, %202, %cst_61 [1] : vector<16x16xf32> to vector<16xf32>
    %204 = vector.shape_cast %203 : vector<16xf32> to vector<16x1xf32>
    %205 = vector.extract_strided_slice %66 {offsets = [8, 0], sizes = [1, 64], strides = [1, 1]} : vector<16x64xf32> to vector<1x64xf32>
    %206 = vector.broadcast %205 : vector<1x64xf32> to vector<8x64xf32>
    %207 = arith.mulf %206, %3 : vector<8x64xf32>
    %208 = math.exp %207 : vector<8x64xf32>
    %209 = vector.extract_strided_slice %204 {offsets = [0, 0], sizes = [8, 1], strides = [1, 1]} : vector<16x1xf32> to vector<8x1xf32>
    %210 = vector.extract_strided_slice %67 {offsets = [8, 0], sizes = [1, 64], strides = [1, 1]} : vector<16x64xf32> to vector<1x64xf32>
    %211 = vector.broadcast %209 : vector<8x1xf32> to vector<8x64xf32>
    %212 = vector.broadcast %210 : vector<1x64xf32> to vector<8x64xf32>
    %213 = arith.mulf %211, %212 : vector<8x64xf32>
    %214 = vector.extract_strided_slice %204 {offsets = [8, 0], sizes = [8, 1], strides = [1, 1]} : vector<16x1xf32> to vector<8x1xf32>
    %c9_i32 = arith.constant 9 : i32
    %215 = vector.broadcast %c9_i32 : i32 to vector<16x16xi32>
    %216 = arith.cmpi eq, %70, %215 : vector<16x16xi32>
    %cst_62 = arith.constant 0.000000e+00 : f32
    %217 = vector.broadcast %cst_62 : f32 to vector<16x16xf32>
    %218 = arith.select %216, %69, %217 : vector<16x16xi1>, vector<16x16xf32>
    %cst_63 = arith.constant dense<0.000000e+00> : vector<16xf32>
    %219 = vector.multi_reduction <add>, %218, %cst_63 [1] : vector<16x16xf32> to vector<16xf32>
    %220 = vector.shape_cast %219 : vector<16xf32> to vector<16x1xf32>
    %221 = vector.extract_strided_slice %66 {offsets = [9, 0], sizes = [1, 64], strides = [1, 1]} : vector<16x64xf32> to vector<1x64xf32>
    %222 = vector.broadcast %221 : vector<1x64xf32> to vector<8x64xf32>
    %223 = arith.mulf %222, %3 : vector<8x64xf32>
    %224 = math.exp %223 : vector<8x64xf32>
    %225 = vector.extract_strided_slice %220 {offsets = [0, 0], sizes = [8, 1], strides = [1, 1]} : vector<16x1xf32> to vector<8x1xf32>
    %226 = vector.extract_strided_slice %67 {offsets = [9, 0], sizes = [1, 64], strides = [1, 1]} : vector<16x64xf32> to vector<1x64xf32>
    %227 = vector.broadcast %225 : vector<8x1xf32> to vector<8x64xf32>
    %228 = vector.broadcast %226 : vector<1x64xf32> to vector<8x64xf32>
    %229 = arith.mulf %227, %228 : vector<8x64xf32>
    %230 = vector.extract_strided_slice %220 {offsets = [8, 0], sizes = [8, 1], strides = [1, 1]} : vector<16x1xf32> to vector<8x1xf32>
    %c10_i32 = arith.constant 10 : i32
    %231 = vector.broadcast %c10_i32 : i32 to vector<16x16xi32>
    %232 = arith.cmpi eq, %70, %231 : vector<16x16xi32>
    %cst_64 = arith.constant 0.000000e+00 : f32
    %233 = vector.broadcast %cst_64 : f32 to vector<16x16xf32>
    %234 = arith.select %232, %69, %233 : vector<16x16xi1>, vector<16x16xf32>
    %cst_65 = arith.constant dense<0.000000e+00> : vector<16xf32>
    %235 = vector.multi_reduction <add>, %234, %cst_65 [1] : vector<16x16xf32> to vector<16xf32>
    %236 = vector.shape_cast %235 : vector<16xf32> to vector<16x1xf32>
    %237 = vector.extract_strided_slice %66 {offsets = [10, 0], sizes = [1, 64], strides = [1, 1]} : vector<16x64xf32> to vector<1x64xf32>
    %238 = vector.broadcast %237 : vector<1x64xf32> to vector<8x64xf32>
    %239 = arith.mulf %238, %3 : vector<8x64xf32>
    %240 = math.exp %239 : vector<8x64xf32>
    %241 = vector.extract_strided_slice %236 {offsets = [0, 0], sizes = [8, 1], strides = [1, 1]} : vector<16x1xf32> to vector<8x1xf32>
    %242 = vector.extract_strided_slice %67 {offsets = [10, 0], sizes = [1, 64], strides = [1, 1]} : vector<16x64xf32> to vector<1x64xf32>
    %243 = vector.broadcast %241 : vector<8x1xf32> to vector<8x64xf32>
    %244 = vector.broadcast %242 : vector<1x64xf32> to vector<8x64xf32>
    %245 = arith.mulf %243, %244 : vector<8x64xf32>
    %246 = vector.extract_strided_slice %236 {offsets = [8, 0], sizes = [8, 1], strides = [1, 1]} : vector<16x1xf32> to vector<8x1xf32>
    %c11_i32 = arith.constant 11 : i32
    %247 = vector.broadcast %c11_i32 : i32 to vector<16x16xi32>
    %248 = arith.cmpi eq, %70, %247 : vector<16x16xi32>
    %cst_66 = arith.constant 0.000000e+00 : f32
    %249 = vector.broadcast %cst_66 : f32 to vector<16x16xf32>
    %250 = arith.select %248, %69, %249 : vector<16x16xi1>, vector<16x16xf32>
    %cst_67 = arith.constant dense<0.000000e+00> : vector<16xf32>
    %251 = vector.multi_reduction <add>, %250, %cst_67 [1] : vector<16x16xf32> to vector<16xf32>
    %252 = vector.shape_cast %251 : vector<16xf32> to vector<16x1xf32>
    %253 = vector.extract_strided_slice %66 {offsets = [11, 0], sizes = [1, 64], strides = [1, 1]} : vector<16x64xf32> to vector<1x64xf32>
    %254 = vector.broadcast %253 : vector<1x64xf32> to vector<8x64xf32>
    %255 = arith.mulf %254, %3 : vector<8x64xf32>
    %256 = math.exp %255 : vector<8x64xf32>
    %257 = vector.extract_strided_slice %252 {offsets = [0, 0], sizes = [8, 1], strides = [1, 1]} : vector<16x1xf32> to vector<8x1xf32>
    %258 = vector.extract_strided_slice %67 {offsets = [11, 0], sizes = [1, 64], strides = [1, 1]} : vector<16x64xf32> to vector<1x64xf32>
    %259 = vector.broadcast %257 : vector<8x1xf32> to vector<8x64xf32>
    %260 = vector.broadcast %258 : vector<1x64xf32> to vector<8x64xf32>
    %261 = arith.mulf %259, %260 : vector<8x64xf32>
    %262 = vector.extract_strided_slice %252 {offsets = [8, 0], sizes = [8, 1], strides = [1, 1]} : vector<16x1xf32> to vector<8x1xf32>
    %c12_i32 = arith.constant 12 : i32
    %263 = vector.broadcast %c12_i32 : i32 to vector<16x16xi32>
    %264 = arith.cmpi eq, %70, %263 : vector<16x16xi32>
    %cst_68 = arith.constant 0.000000e+00 : f32
    %265 = vector.broadcast %cst_68 : f32 to vector<16x16xf32>
    %266 = arith.select %264, %69, %265 : vector<16x16xi1>, vector<16x16xf32>
    %cst_69 = arith.constant dense<0.000000e+00> : vector<16xf32>
    %267 = vector.multi_reduction <add>, %266, %cst_69 [1] : vector<16x16xf32> to vector<16xf32>
    %268 = vector.shape_cast %267 : vector<16xf32> to vector<16x1xf32>
    %269 = vector.extract_strided_slice %66 {offsets = [12, 0], sizes = [1, 64], strides = [1, 1]} : vector<16x64xf32> to vector<1x64xf32>
    %270 = vector.broadcast %269 : vector<1x64xf32> to vector<8x64xf32>
    %271 = arith.mulf %270, %3 : vector<8x64xf32>
    %272 = math.exp %271 : vector<8x64xf32>
    %273 = vector.extract_strided_slice %268 {offsets = [0, 0], sizes = [8, 1], strides = [1, 1]} : vector<16x1xf32> to vector<8x1xf32>
    %274 = vector.extract_strided_slice %67 {offsets = [12, 0], sizes = [1, 64], strides = [1, 1]} : vector<16x64xf32> to vector<1x64xf32>
    %275 = vector.broadcast %273 : vector<8x1xf32> to vector<8x64xf32>
    %276 = vector.broadcast %274 : vector<1x64xf32> to vector<8x64xf32>
    %277 = arith.mulf %275, %276 : vector<8x64xf32>
    %278 = vector.extract_strided_slice %268 {offsets = [8, 0], sizes = [8, 1], strides = [1, 1]} : vector<16x1xf32> to vector<8x1xf32>
    %c13_i32 = arith.constant 13 : i32
    %279 = vector.broadcast %c13_i32 : i32 to vector<16x16xi32>
    %280 = arith.cmpi eq, %70, %279 : vector<16x16xi32>
    %cst_70 = arith.constant 0.000000e+00 : f32
    %281 = vector.broadcast %cst_70 : f32 to vector<16x16xf32>
    %282 = arith.select %280, %69, %281 : vector<16x16xi1>, vector<16x16xf32>
    %cst_71 = arith.constant dense<0.000000e+00> : vector<16xf32>
    %283 = vector.multi_reduction <add>, %282, %cst_71 [1] : vector<16x16xf32> to vector<16xf32>
    %284 = vector.shape_cast %283 : vector<16xf32> to vector<16x1xf32>
    %285 = vector.extract_strided_slice %66 {offsets = [13, 0], sizes = [1, 64], strides = [1, 1]} : vector<16x64xf32> to vector<1x64xf32>
    %286 = vector.broadcast %285 : vector<1x64xf32> to vector<8x64xf32>
    %287 = arith.mulf %286, %3 : vector<8x64xf32>
    %288 = math.exp %287 : vector<8x64xf32>
    %289 = vector.extract_strided_slice %284 {offsets = [0, 0], sizes = [8, 1], strides = [1, 1]} : vector<16x1xf32> to vector<8x1xf32>
    %290 = vector.extract_strided_slice %67 {offsets = [13, 0], sizes = [1, 64], strides = [1, 1]} : vector<16x64xf32> to vector<1x64xf32>
    %291 = vector.broadcast %289 : vector<8x1xf32> to vector<8x64xf32>
    %292 = vector.broadcast %290 : vector<1x64xf32> to vector<8x64xf32>
    %293 = arith.mulf %291, %292 : vector<8x64xf32>
    %294 = vector.extract_strided_slice %284 {offsets = [8, 0], sizes = [8, 1], strides = [1, 1]} : vector<16x1xf32> to vector<8x1xf32>
    %c14_i32 = arith.constant 14 : i32
    %295 = vector.broadcast %c14_i32 : i32 to vector<16x16xi32>
    %296 = arith.cmpi eq, %70, %295 : vector<16x16xi32>
    %cst_72 = arith.constant 0.000000e+00 : f32
    %297 = vector.broadcast %cst_72 : f32 to vector<16x16xf32>
    %298 = arith.select %296, %69, %297 : vector<16x16xi1>, vector<16x16xf32>
    %cst_73 = arith.constant dense<0.000000e+00> : vector<16xf32>
    %299 = vector.multi_reduction <add>, %298, %cst_73 [1] : vector<16x16xf32> to vector<16xf32>
    %300 = vector.shape_cast %299 : vector<16xf32> to vector<16x1xf32>
    %301 = vector.extract_strided_slice %66 {offsets = [14, 0], sizes = [1, 64], strides = [1, 1]} : vector<16x64xf32> to vector<1x64xf32>
    %302 = vector.broadcast %301 : vector<1x64xf32> to vector<8x64xf32>
    %303 = arith.mulf %302, %3 : vector<8x64xf32>
    %304 = math.exp %303 : vector<8x64xf32>
    %305 = vector.extract_strided_slice %300 {offsets = [0, 0], sizes = [8, 1], strides = [1, 1]} : vector<16x1xf32> to vector<8x1xf32>
    %306 = vector.extract_strided_slice %67 {offsets = [14, 0], sizes = [1, 64], strides = [1, 1]} : vector<16x64xf32> to vector<1x64xf32>
    %307 = vector.broadcast %305 : vector<8x1xf32> to vector<8x64xf32>
    %308 = vector.broadcast %306 : vector<1x64xf32> to vector<8x64xf32>
    %309 = arith.mulf %307, %308 : vector<8x64xf32>
    %310 = vector.extract_strided_slice %300 {offsets = [8, 0], sizes = [8, 1], strides = [1, 1]} : vector<16x1xf32> to vector<8x1xf32>
    %c15_i32 = arith.constant 15 : i32
    %311 = vector.broadcast %c15_i32 : i32 to vector<16x16xi32>
    %312 = arith.cmpi eq, %70, %311 : vector<16x16xi32>
    %cst_74 = arith.constant 0.000000e+00 : f32
    %313 = vector.broadcast %cst_74 : f32 to vector<16x16xf32>
    %314 = arith.select %312, %69, %313 : vector<16x16xi1>, vector<16x16xf32>
    %cst_75 = arith.constant dense<0.000000e+00> : vector<16xf32>
    %315 = vector.multi_reduction <add>, %314, %cst_75 [1] : vector<16x16xf32> to vector<16xf32>
    %316 = vector.shape_cast %315 : vector<16xf32> to vector<16x1xf32>
    %317 = vector.extract_strided_slice %66 {offsets = [15, 0], sizes = [1, 64], strides = [1, 1]} : vector<16x64xf32> to vector<1x64xf32>
    %318 = vector.broadcast %317 : vector<1x64xf32> to vector<8x64xf32>
    %319 = arith.mulf %318, %3 : vector<8x64xf32>
    %320 = math.exp %319 : vector<8x64xf32>
    %321 = vector.extract_strided_slice %316 {offsets = [0, 0], sizes = [8, 1], strides = [1, 1]} : vector<16x1xf32> to vector<8x1xf32>
    %322 = vector.extract_strided_slice %67 {offsets = [15, 0], sizes = [1, 64], strides = [1, 1]} : vector<16x64xf32> to vector<1x64xf32>
    %323 = vector.broadcast %321 : vector<8x1xf32> to vector<8x64xf32>
    %324 = vector.broadcast %322 : vector<1x64xf32> to vector<8x64xf32>
    %325 = arith.mulf %323, %324 : vector<8x64xf32>
    %326 = vector.extract_strided_slice %316 {offsets = [8, 0], sizes = [8, 1], strides = [1, 1]} : vector<16x1xf32> to vector<8x1xf32>
    %cst_76 = arith.constant 0.000000e+00 : f32
    %327 = vector.broadcast %cst_76 : f32 to vector<8x64xf32>
    %328 = arith.mulf %80, %327 : vector<8x64xf32>
    %329 = arith.addf %328, %85 : vector<8x64xf32>
    %330 = vector.broadcast %86 : vector<8x1xf32> to vector<8x64xf32>
    %331 = arith.mulf %330, %329 : vector<8x64xf32>
    %cst_77 = arith.constant dense<0.000000e+00> : vector<64xf32>
    %332 = vector.multi_reduction <add>, %331, %cst_77 [0] : vector<8x64xf32> to vector<64xf32>
    %333 = vector.shape_cast %332 : vector<64xf32> to vector<1x64xf32>
    %c0_78 = arith.constant 0 : index
    %c0_79 = arith.constant 0 : index
    %334 = vector.load %arg9[%c0_78, %c0_79] : memref<16x64xf32, #tpu.memory_space<vmem>>, vector<1x64xf32>
    tpu.vector_store %arg9[%c0_78, %c0_79], %333 {strides = array<i32>} : memref<16x64xf32, #tpu.memory_space<vmem>>, vector<1x64xf32>,
    %335 = arith.mulf %96, %329 : vector<8x64xf32>
    %336 = arith.addf %335, %101 : vector<8x64xf32>
    %337 = vector.broadcast %102 : vector<8x1xf32> to vector<8x64xf32>
    %338 = arith.mulf %337, %336 : vector<8x64xf32>
    %cst_80 = arith.constant dense<0.000000e+00> : vector<64xf32>
    %339 = vector.multi_reduction <add>, %338, %cst_80 [0] : vector<8x64xf32> to vector<64xf32>
    %340 = vector.shape_cast %339 : vector<64xf32> to vector<1x64xf32>
    %c1_81 = arith.constant 1 : index
    %c0_82 = arith.constant 0 : index
    %341 = vector.load %arg9[%c1_81, %c0_82] : memref<16x64xf32, #tpu.memory_space<vmem>>, vector<1x64xf32>
    tpu.vector_store %arg9[%c1_81, %c0_82], %340 {strides = array<i32>} : memref<16x64xf32, #tpu.memory_space<vmem>>, vector<1x64xf32>,
    %342 = arith.mulf %112, %336 : vector<8x64xf32>
    %343 = arith.addf %342, %117 : vector<8x64xf32>
    %344 = vector.broadcast %118 : vector<8x1xf32> to vector<8x64xf32>
    %345 = arith.mulf %344, %343 : vector<8x64xf32>
    %cst_83 = arith.constant dense<0.000000e+00> : vector<64xf32>
    %346 = vector.multi_reduction <add>, %345, %cst_83 [0] : vector<8x64xf32> to vector<64xf32>
    %347 = vector.shape_cast %346 : vector<64xf32> to vector<1x64xf32>
    %c2_84 = arith.constant 2 : index
    %c0_85 = arith.constant 0 : index
    %348 = vector.load %arg9[%c2_84, %c0_85] : memref<16x64xf32, #tpu.memory_space<vmem>>, vector<1x64xf32>
    tpu.vector_store %arg9[%c2_84, %c0_85], %347 {strides = array<i32>} : memref<16x64xf32, #tpu.memory_space<vmem>>, vector<1x64xf32>,
    %349 = arith.mulf %128, %343 : vector<8x64xf32>
    %350 = arith.addf %349, %133 : vector<8x64xf32>
    %351 = vector.broadcast %134 : vector<8x1xf32> to vector<8x64xf32>
    %352 = arith.mulf %351, %350 : vector<8x64xf32>
    %cst_86 = arith.constant dense<0.000000e+00> : vector<64xf32>
    %353 = vector.multi_reduction <add>, %352, %cst_86 [0] : vector<8x64xf32> to vector<64xf32>
    %354 = vector.shape_cast %353 : vector<64xf32> to vector<1x64xf32>
    %c3_87 = arith.constant 3 : index
    %c0_88 = arith.constant 0 : index
    %355 = vector.load %arg9[%c3_87, %c0_88] : memref<16x64xf32, #tpu.memory_space<vmem>>, vector<1x64xf32>
    tpu.vector_store %arg9[%c3_87, %c0_88], %354 {strides = array<i32>} : memref<16x64xf32, #tpu.memory_space<vmem>>, vector<1x64xf32>,
    %356 = arith.mulf %144, %350 : vector<8x64xf32>
    %357 = arith.addf %356, %149 : vector<8x64xf32>
    %358 = vector.broadcast %150 : vector<8x1xf32> to vector<8x64xf32>
    %359 = arith.mulf %358, %357 : vector<8x64xf32>
    %cst_89 = arith.constant dense<0.000000e+00> : vector<64xf32>
    %360 = vector.multi_reduction <add>, %359, %cst_89 [0] : vector<8x64xf32> to vector<64xf32>
    %361 = vector.shape_cast %360 : vector<64xf32> to vector<1x64xf32>
    %c4_90 = arith.constant 4 : index
    %c0_91 = arith.constant 0 : index
    %362 = vector.load %arg9[%c4_90, %c0_91] : memref<16x64xf32, #tpu.memory_space<vmem>>, vector<1x64xf32>
    tpu.vector_store %arg9[%c4_90, %c0_91], %361 {strides = array<i32>} : memref<16x64xf32, #tpu.memory_space<vmem>>, vector<1x64xf32>,
    %363 = arith.mulf %160, %357 : vector<8x64xf32>
    %364 = arith.addf %363, %165 : vector<8x64xf32>
    %365 = vector.broadcast %166 : vector<8x1xf32> to vector<8x64xf32>
    %366 = arith.mulf %365, %364 : vector<8x64xf32>
    %cst_92 = arith.constant dense<0.000000e+00> : vector<64xf32>
    %367 = vector.multi_reduction <add>, %366, %cst_92 [0] : vector<8x64xf32> to vector<64xf32>
    %368 = vector.shape_cast %367 : vector<64xf32> to vector<1x64xf32>
    %c5_93 = arith.constant 5 : index
    %c0_94 = arith.constant 0 : index
    %369 = vector.load %arg9[%c5_93, %c0_94] : memref<16x64xf32, #tpu.memory_space<vmem>>, vector<1x64xf32>
    tpu.vector_store %arg9[%c5_93, %c0_94], %368 {strides = array<i32>} : memref<16x64xf32, #tpu.memory_space<vmem>>, vector<1x64xf32>,
    %370 = arith.mulf %176, %364 : vector<8x64xf32>
    %371 = arith.addf %370, %181 : vector<8x64xf32>
    %372 = vector.broadcast %182 : vector<8x1xf32> to vector<8x64xf32>
    %373 = arith.mulf %372, %371 : vector<8x64xf32>
    %cst_95 = arith.constant dense<0.000000e+00> : vector<64xf32>
    %374 = vector.multi_reduction <add>, %373, %cst_95 [0] : vector<8x64xf32> to vector<64xf32>
    %375 = vector.shape_cast %374 : vector<64xf32> to vector<1x64xf32>
    %c6_96 = arith.constant 6 : index
    %c0_97 = arith.constant 0 : index
    %376 = vector.load %arg9[%c6_96, %c0_97] : memref<16x64xf32, #tpu.memory_space<vmem>>, vector<1x64xf32>
    tpu.vector_store %arg9[%c6_96, %c0_97], %375 {strides = array<i32>} : memref<16x64xf32, #tpu.memory_space<vmem>>, vector<1x64xf32>,
    %377 = arith.mulf %192, %371 : vector<8x64xf32>
    %378 = arith.addf %377, %197 : vector<8x64xf32>
    %379 = vector.broadcast %198 : vector<8x1xf32> to vector<8x64xf32>
    %380 = arith.mulf %379, %378 : vector<8x64xf32>
    %cst_98 = arith.constant dense<0.000000e+00> : vector<64xf32>
    %381 = vector.multi_reduction <add>, %380, %cst_98 [0] : vector<8x64xf32> to vector<64xf32>
    %382 = vector.shape_cast %381 : vector<64xf32> to vector<1x64xf32>
    %c7_99 = arith.constant 7 : index
    %c0_100 = arith.constant 0 : index
    %383 = vector.load %arg9[%c7_99, %c0_100] : memref<16x64xf32, #tpu.memory_space<vmem>>, vector<1x64xf32>
    tpu.vector_store %arg9[%c7_99, %c0_100], %382 {strides = array<i32>} : memref<16x64xf32, #tpu.memory_space<vmem>>, vector<1x64xf32>,
    %cst_101 = arith.constant 0.000000e+00 : f32
    %384 = vector.broadcast %cst_101 : f32 to vector<8x64xf32>
    %385 = arith.mulf %208, %384 : vector<8x64xf32>
    %386 = arith.addf %385, %213 : vector<8x64xf32>
    %387 = vector.broadcast %214 : vector<8x1xf32> to vector<8x64xf32>
    %388 = arith.mulf %387, %386 : vector<8x64xf32>
    %cst_102 = arith.constant dense<0.000000e+00> : vector<64xf32>
    %389 = vector.multi_reduction <add>, %388, %cst_102 [0] : vector<8x64xf32> to vector<64xf32>
    %390 = vector.shape_cast %389 : vector<64xf32> to vector<1x64xf32>
    %c8_103 = arith.constant 8 : index
    %c0_104 = arith.constant 0 : index
    %391 = vector.load %arg9[%c8_103, %c0_104] : memref<16x64xf32, #tpu.memory_space<vmem>>, vector<1x64xf32>
    tpu.vector_store %arg9[%c8_103, %c0_104], %390 {strides = array<i32>} : memref<16x64xf32, #tpu.memory_space<vmem>>, vector<1x64xf32>,
    %392 = arith.mulf %224, %386 : vector<8x64xf32>
    %393 = arith.addf %392, %229 : vector<8x64xf32>
    %394 = vector.broadcast %230 : vector<8x1xf32> to vector<8x64xf32>
    %395 = arith.mulf %394, %393 : vector<8x64xf32>
    %cst_105 = arith.constant dense<0.000000e+00> : vector<64xf32>
    %396 = vector.multi_reduction <add>, %395, %cst_105 [0] : vector<8x64xf32> to vector<64xf32>
    %397 = vector.shape_cast %396 : vector<64xf32> to vector<1x64xf32>
    %c9 = arith.constant 9 : index
    %c0_106 = arith.constant 0 : index
    %398 = vector.load %arg9[%c9, %c0_106] : memref<16x64xf32, #tpu.memory_space<vmem>>, vector<1x64xf32>
    tpu.vector_store %arg9[%c9, %c0_106], %397 {strides = array<i32>} : memref<16x64xf32, #tpu.memory_space<vmem>>, vector<1x64xf32>,
    %399 = arith.mulf %240, %393 : vector<8x64xf32>
    %400 = arith.addf %399, %245 : vector<8x64xf32>
    %401 = vector.broadcast %246 : vector<8x1xf32> to vector<8x64xf32>
    %402 = arith.mulf %401, %400 : vector<8x64xf32>
    %cst_107 = arith.constant dense<0.000000e+00> : vector<64xf32>
    %403 = vector.multi_reduction <add>, %402, %cst_107 [0] : vector<8x64xf32> to vector<64xf32>
    %404 = vector.shape_cast %403 : vector<64xf32> to vector<1x64xf32>
    %c10 = arith.constant 10 : index
    %c0_108 = arith.constant 0 : index
    %405 = vector.load %arg9[%c10, %c0_108] : memref<16x64xf32, #tpu.memory_space<vmem>>, vector<1x64xf32>
    tpu.vector_store %arg9[%c10, %c0_108], %404 {strides = array<i32>} : memref<16x64xf32, #tpu.memory_space<vmem>>, vector<1x64xf32>,
    %406 = arith.mulf %256, %400 : vector<8x64xf32>
    %407 = arith.addf %406, %261 : vector<8x64xf32>
    %408 = vector.broadcast %262 : vector<8x1xf32> to vector<8x64xf32>
    %409 = arith.mulf %408, %407 : vector<8x64xf32>
    %cst_109 = arith.constant dense<0.000000e+00> : vector<64xf32>
    %410 = vector.multi_reduction <add>, %409, %cst_109 [0] : vector<8x64xf32> to vector<64xf32>
    %411 = vector.shape_cast %410 : vector<64xf32> to vector<1x64xf32>
    %c11 = arith.constant 11 : index
    %c0_110 = arith.constant 0 : index
    %412 = vector.load %arg9[%c11, %c0_110] : memref<16x64xf32, #tpu.memory_space<vmem>>, vector<1x64xf32>
    tpu.vector_store %arg9[%c11, %c0_110], %411 {strides = array<i32>} : memref<16x64xf32, #tpu.memory_space<vmem>>, vector<1x64xf32>,
    %413 = arith.mulf %272, %407 : vector<8x64xf32>
    %414 = arith.addf %413, %277 : vector<8x64xf32>
    %415 = vector.broadcast %278 : vector<8x1xf32> to vector<8x64xf32>
    %416 = arith.mulf %415, %414 : vector<8x64xf32>
    %cst_111 = arith.constant dense<0.000000e+00> : vector<64xf32>
    %417 = vector.multi_reduction <add>, %416, %cst_111 [0] : vector<8x64xf32> to vector<64xf32>
    %418 = vector.shape_cast %417 : vector<64xf32> to vector<1x64xf32>
    %c12 = arith.constant 12 : index
    %c0_112 = arith.constant 0 : index
    %419 = vector.load %arg9[%c12, %c0_112] : memref<16x64xf32, #tpu.memory_space<vmem>>, vector<1x64xf32>
    tpu.vector_store %arg9[%c12, %c0_112], %418 {strides = array<i32>} : memref<16x64xf32, #tpu.memory_space<vmem>>, vector<1x64xf32>,
    %420 = arith.mulf %288, %414 : vector<8x64xf32>
    %421 = arith.addf %420, %293 : vector<8x64xf32>
    %422 = vector.broadcast %294 : vector<8x1xf32> to vector<8x64xf32>
    %423 = arith.mulf %422, %421 : vector<8x64xf32>
    %cst_113 = arith.constant dense<0.000000e+00> : vector<64xf32>
    %424 = vector.multi_reduction <add>, %423, %cst_113 [0] : vector<8x64xf32> to vector<64xf32>
    %425 = vector.shape_cast %424 : vector<64xf32> to vector<1x64xf32>
    %c13 = arith.constant 13 : index
    %c0_114 = arith.constant 0 : index
    %426 = vector.load %arg9[%c13, %c0_114] : memref<16x64xf32, #tpu.memory_space<vmem>>, vector<1x64xf32>
    tpu.vector_store %arg9[%c13, %c0_114], %425 {strides = array<i32>} : memref<16x64xf32, #tpu.memory_space<vmem>>, vector<1x64xf32>,
    %427 = arith.mulf %304, %421 : vector<8x64xf32>
    %428 = arith.addf %427, %309 : vector<8x64xf32>
    %429 = vector.broadcast %310 : vector<8x1xf32> to vector<8x64xf32>
    %430 = arith.mulf %429, %428 : vector<8x64xf32>
    %cst_115 = arith.constant dense<0.000000e+00> : vector<64xf32>
    %431 = vector.multi_reduction <add>, %430, %cst_115 [0] : vector<8x64xf32> to vector<64xf32>
    %432 = vector.shape_cast %431 : vector<64xf32> to vector<1x64xf32>
    %c14 = arith.constant 14 : index
    %c0_116 = arith.constant 0 : index
    %433 = vector.load %arg9[%c14, %c0_116] : memref<16x64xf32, #tpu.memory_space<vmem>>, vector<1x64xf32>
    tpu.vector_store %arg9[%c14, %c0_116], %432 {strides = array<i32>} : memref<16x64xf32, #tpu.memory_space<vmem>>, vector<1x64xf32>,
    %434 = arith.mulf %320, %428 : vector<8x64xf32>
    %435 = arith.addf %434, %325 : vector<8x64xf32>
    %436 = vector.broadcast %326 : vector<8x1xf32> to vector<8x64xf32>
    %437 = arith.mulf %436, %435 : vector<8x64xf32>
    %cst_117 = arith.constant dense<0.000000e+00> : vector<64xf32>
    %438 = vector.multi_reduction <add>, %437, %cst_117 [0] : vector<8x64xf32> to vector<64xf32>
    %439 = vector.shape_cast %438 : vector<64xf32> to vector<1x64xf32>
    %c15 = arith.constant 15 : index
    %c0_118 = arith.constant 0 : index
    %440 = vector.load %arg9[%c15, %c0_118] : memref<16x64xf32, #tpu.memory_space<vmem>>, vector<1x64xf32>
    tpu.vector_store %arg9[%c15, %c0_118], %439 {strides = array<i32>} : memref<16x64xf32, #tpu.memory_space<vmem>>, vector<1x64xf32>,
    %c0_119 = arith.constant 0 : index
    %c0_120 = arith.constant 0 : index
    %441 = vector.load %arg9[%c0_119, %c0_120] : memref<16x64xf32, #tpu.memory_space<vmem>>, vector<16x64xf32>
    %442 = vector.broadcast %2 : vector<1x64xf32> to vector<16x64xf32>
    %443 = arith.mulf %442, %55 : vector<16x64xf32>
    %444 = arith.addf %441, %443 : vector<16x64xf32>
    %445 = arith.mulf %444, %16 : vector<16x64xf32>
    %c0_121 = arith.constant 0 : index
    %c0_122 = arith.constant 0 : index
    %446 = vector.load %arg6[%c0_121, %c0_122] : memref<64x32xf32, #tpu.memory_space<vmem>>, vector<64x32xf32>
    %cst_123 = arith.constant dense<0.000000e+00> : vector<16x32xf32>
    %447 = tpu.matmul %445, %446, %cst_123 {dimension_numbers = #tpu.dot_dimension_numbers<[1], [0], [0], [1], [0, 0, 1, 1], [], []>} : vector<16x64xf32>, vector<64x32xf32>, vector<16x32xf32> -> vector<16x32xf32>
    %448 = vector.shape_cast %447 : vector<16x32xf32> to vector<2x8x32xf32>
    %c0_124 = arith.constant 0 : index
    %c0_125 = arith.constant 0 : index
    %c0_126 = arith.constant 0 : index
    %449 = vector.load %arg7[%c0_124, %c0_125, %c0_126] : memref<2x8x32xf32, #tpu.memory_space<vmem>>, vector<2x8x32xf32>
    tpu.vector_store %arg7[%c0_124, %c0_125, %c0_126], %448 {strides = array<i32>} : memref<2x8x32xf32, #tpu.memory_space<vmem>>, vector<2x8x32xf32>,
    return
  }
  func.func @transform_0(%arg0: i32) -> (i32, i32, i32) {
    %c0_i32 = arith.constant 0 : i32
    %c0_i32_0 = arith.constant 0 : i32
    %c0_i32_1 = arith.constant 0 : i32
    return %arg0, %c0_i32, %c0_i32_0 : i32, i32, i32
  }
  func.func @transform_1(%arg0: i32) -> (i32, i32) {
    %c0_i32 = arith.constant 0 : i32
    %c0_i32_0 = arith.constant 0 : i32
    %c0_i32_1 = arith.constant 0 : i32
    return %c0_i32, %c0_i32_0 : i32, i32
  }
  func.func @transform_2(%arg0: i32) -> (i32, i32) {
    %c0_i32 = arith.constant 0 : i32
    %c0_i32_0 = arith.constant 0 : i32
    %c0_i32_1 = arith.constant 0 : i32
    return %c0_i32, %c0_i32_0 : i32, i32
  }
  func.func @transform_3(%arg0: i32) -> (i32, i32) {
    %c0_i32 = arith.constant 0 : i32
    %c0_i32_0 = arith.constant 0 : i32
    %c0_i32_1 = arith.constant 0 : i32
    return %c0_i32, %c0_i32_0 : i32, i32
  }
  func.func @transform_4(%arg0: i32) -> (i32, i32) {
    %c0_i32 = arith.constant 0 : i32
    %c0_i32_0 = arith.constant 0 : i32
    %c0_i32_1 = arith.constant 0 : i32
    return %c0_i32, %c0_i32_0 : i32, i32
  }
  func.func @transform_5(%arg0: i32) -> (i32, i32) {
    %c0_i32 = arith.constant 0 : i32
    %c0_i32_0 = arith.constant 0 : i32
    %c0_i32_1 = arith.constant 0 : i32
    return %c0_i32, %c0_i32_0 : i32, i32
  }
  func.func @transform_6(%arg0: i32) -> (i32, i32, i32) {
    %c0_i32 = arith.constant 0 : i32
    %c0_i32_0 = arith.constant 0 : i32
    %c0_i32_1 = arith.constant 0 : i32
    return %arg0, %c0_i32, %c0_i32_0 : i32, i32, i32
  }
}

</mosaic_0001>

<bundles_post_ra>
// kernel: tpu_custom_call.1
= control target key start
LH: loop header
LB: loop body
LE: loop exit
PB: predicated region body
PF: predicated region fallthrough
CT: control target
= control target key end

     0   :  { %11 = vsyncpa [#allocation5], 0  ;;  %s1884_s0 = inlined_call_operand.hbm [shape: f32[2,8,32], index: 0, kind: input, shape index: {}]   ;;  %s1885_s1 = inlined_call_operand.vmem [shape: f32[32,128], index: 1, kind: input, shape index: {}]   ;;  %s1886_s2 = inlined_call_operand.vmem [shape: f32[64,64], index: 2, kind: input, shape index: {}]   ;;  %s1887_s3 = inlined_call_operand.hbm [shape: f32[16,64], index: 3, kind: input, shape index: {}]   ;;  %s1888_s4 = inlined_call_operand.hbm [shape: f32[15,64], index: 4, kind: input, shape index: {}]   ;;  %s1889_s5 = inlined_call_operand.vmem [shape: f32[64,32], index: 5, kind: input, shape index: {}]   ;;  %s1890_s6 = inlined_call_operand.hbm [shape: f32[2,8,32], index: 6, kind: output, shape index: {}]  }
   0x1   :  { %12 = vsyncpa [#allocation8], 0 }
   0x2   :  { %13 = vsyncpa [#allocation6], 0  ;;  %s1340_s21 = smov [#allocation7]   ;;  %s1341_s23 = smov [#allocation4]  }
   0x3   :  { %s35_s22 = sshll.u32 %s1340_s21, 4  ;;  %s19_s24 = sshll.u32 %s1341_s23, 4  ;;  %s36_s22 = int_to_ptr.vmem [resolvable:$true] %s35_s22  ;;  %s20_s24 = int_to_ptr.vmem [resolvable:$true] %s19_s24 }
   0x4   :  { %s1262_s25 = scalar_lea.vmem %s36_s22, 256  ;;  %p1267_p1 = scmp.lt.s32.totalorder %s36_s22, %s36_s22 }
   0x5   :  { %p1263_p0 = scmp.ne.s32.totalorder %s36_s22, %s1262_s25  ;;  %p1268_p2 = scmp.lt.s32.totalorder %s1262_s25, %s1262_s25 }
   0x7   :  { %p1269_p3 = por %p1268_p2, %p1267_p1 }
   0x9   :  { %p1270_p4 = pnand %p1269_p3, %p1263_p0 }
   0xb   :  { %1273 = shalt.err (!%p1270_p4)
}
   0xc   :  { %s1342_s26 = smov 128   ;;  %s1343_s27 = smov 8  }
   0xd   :  { %41 = dma.hbm_to_vmem [thread:$0]  %s1887_s3, 256, %s36_s22, [#allocation8], %s1342_s26, %s1342_s26, %s1343_s27  }
   0xe   :  { %s1282_s30 = scalar_lea.vmem %s20_s24, 256  ;;  %p1287_p6 = scmp.lt.s32.totalorder %s20_s24, %s20_s24 }
   0xf   :  { %p1283_p5 = scmp.ne.s32.totalorder %s20_s24, %s1282_s30  ;;  %p1288_p7 = scmp.lt.s32.totalorder %s1282_s30, %s1282_s30 }
  0x11   :  { %p1289_p8 = por %p1288_p7, %p1287_p6 }
  0x13   :  { %p1290_p9 = pnand %p1289_p8, %p1283_p5 }
  0x15   :  { %1293 = shalt.err (!%p1290_p9)
}
  0x16   :  { %25 = dma.hbm_to_vmem [thread:$0]  %s1884_s0, 256, %s20_s24, [#allocation5], %s1342_s26, %s1342_s26, %s1343_s27  }
  0x17   :  { %s1344_s9 = smov [#allocation9]  }
  0x18   :  { %s47_s10 = sshll.u32 %s1344_s9, 4  ;;  %s48_s10 = int_to_ptr.vmem [resolvable:$true] %s47_s10 }
  0x19   :  { %s1302_s11 = scalar_lea.vmem %s48_s10, 256  ;;  %p1307_p11 = scmp.lt.s32.totalorder %s48_s10, %s48_s10 }
  0x1a   :  { %p1303_p10 = scmp.ne.s32.totalorder %s48_s10, %s1302_s11  ;;  %p1308_p12 = scmp.lt.s32.totalorder %s1302_s11, %s1302_s11 }
  0x1c   :  { %p1309_p13 = por %p1308_p12, %p1307_p11 }
  0x1e   :  { %p1310_p0 = pnand %p1309_p13, %p1303_p10 }
  0x20   :  { %1313 = shalt.err (!%p1310_p0)
}
  0x21   :  { %53 = dma.hbm_to_vmem [thread:$0]  %s1888_s4, 256, %s48_s10, [#allocation8], %s1342_s26, %s1342_s26, %s1343_s27  }
  0x22   :  { %1334 = dma.done.wait [#allocation5], 256  }
  0x23   :  { %1335 = vsyncadd [#allocation5], 4294967040 }
  0x24   :  { %1336 = dma.done.wait [#allocation8], 512  }
  0x25   :  { %1337 = vsyncadd [#allocation8], 4294966784  ;;  %vm75_vm0 = vcmask 261120   ;;  %v74_v0 = vld [vmem:[%s1885_s1 + $0x18] sm:$0xff]  ;;  %v73_v1 = vld [vmem:[%s1885_s1 + $0x10] sm:$0xff]  ;;  %vm169_vm1 = vcmask 523264   ;;  %v442_v60 = vlaneseq }
  0x26   :  { %1134 = vmatprep.subr.mxu1 %v74_v0  ;;  %v69_v2 = vld [vmem:[#allocation4] sm:$0xff]  ;;  %v72_v3 = vld [vmem:[%s1885_s1 + $0x8] sm:$0xff]  ;;  %v71_v4 = vld [vmem:[%s1885_s1] sm:$0xff]  ;;  %v1345_v6 = vmov 0.0   ;;  %vm447_vm4 = vcmask 130048  }
  0x27   :  { %1135 = vmatpush3.msra.mxu1 %v74_v0  ;;  %1142 = vmatprep.mubr.msk.f32.mxu1 %vm75_vm0, %v69_v2  ;;  %v70_v5 = vld [vmem:[#allocation4 + $0x8] sm:$0xff]  ;;  %171 = vst.msk [vmem:[#allocation2 + $0x10] sm:$0xff] %vm169_vm1, %v1345_v6  ;;  %170 = vst.msk [vmem:[#allocation2] sm:$0xff] %vm169_vm1, %v1345_v6  ;;  %v242_v8 = vld [vmem:[%s1886_s2 + $0x30] sm:$0xff]  ;;  %v1468_v61 = vand.u32 127, %v442_v60 }
  0x28   :  { %1136 = vmatprep.subr.mxu1 %v73_v1  ;;  %v243_v7 = vld [vmem:[%s1886_s2 + $0x38] sm:$0xff]  ;;  %v241_v9 = vld [vmem:[%s1886_s2 + $0x28] sm:$0xff]  ;;  %v240_v10 = vld [vmem:[%s1886_s2 + $0x20] sm:$0xff] }
  0x29   :  { %1137 = vmatpush3.msra.mxu1 %v73_v1  ;;  %v239_v11 = vld [vmem:[%s1886_s2 + $0x18] sm:$0xff]  ;;  %v238_v12 = vld [vmem:[%s1886_s2 + $0x10] sm:$0xff]  ;;  %v237_v13 = vld [vmem:[%s1886_s2 + $0x8] sm:$0xff]  ;;  %vm466_vm2 = vcmp.eq.s32.totalorder %v1468_v61, 1  ;;  %vm444_vm3 = vcmp.eq.s32.totalorder %v1468_v61, 0  ;;  %vm508_vm5 = vcmp.eq.s32.totalorder %v1468_v61, 3 }
  0x2a   :  { %1138 = vmatprep.subr.mxu1 %v72_v3  ;;  %v236_v14 = vld [vmem:[%s1886_s2] sm:$0xff]  ;;  %v1089_v18 = vld [vmem:[#allocation9] ss:$0 sm:$0xff]  ;;  %v1090_v19 = vld [vmem:[#allocation9 + $0x1] ss:$0 sm:$0xff]  ;;  %vm487_vm6 = vcmp.eq.s32.totalorder %v1468_v61, 2 }
  0x2b   :  { %1139 = vmatpush3.msra.mxu1 %v72_v3  ;;  %v359_v15 = vld [vmem:[#allocation7] sm:$0xff]  ;;  %v1091_v20 = vld [vmem:[#allocation9 + $0x2] ss:$0 sm:$0xff]  ;;  %v1092_v27 = vld [vmem:[#allocation9 + $0x3] ss:$0 sm:$0xff]  ;;  %vm550_vm7 = vcmp.eq.s32.totalorder %v1468_v61, 5 }
  0x2c   :  { %1140 = vmatprep.subr.mxu1 %v71_v4  ;;  %1168 = vmatprep.mubr.msk.f32.mxu0 %vm169_vm1, %v359_v15  ;;  %v1093_v40 = vld [vmem:[#allocation9 + $0x4] ss:$0 sm:$0xff]  ;;  %v360_v59 = vld [vmem:[#allocation7 + $0x8] sm:$0xff]  ;;  %vm529_vm8 = vcmp.eq.s32.totalorder %v1468_v61, 4  ;;  %vm592_vm9 = vcmp.eq.s32.totalorder %v1468_v61, 7  ;;  %vm571_vm10 = vcmp.eq.s32.totalorder %v1468_v61, 6 }
  0x2d   :  { %1141 = vmatpush3.msra.mxu1 %v71_v4  ;;  %vm634_vm11 = vcmp.eq.s32.totalorder %v1468_v61, 9  ;;  %vm613_vm12 = vcmp.eq.s32.totalorder %v1468_v61, 8  ;;  %vm676_vm13 = vcmp.eq.s32.totalorder %v1468_v61, 11  ;;  %vm655_vm14 = vcmp.eq.s32.totalorder %v1468_v61, 10  ;;  %s1346_s2 = smov 64  }
  0x2e   :  { %1143 = vmatmul.mubr.msk.f32.vlgmr.msra.gmra.mxu1 %vm75_vm0, %v70_v5  ;;  %1145 = vmatprep.subr.mxu1 %v243_v7  ;;  %vm697_vm15 = vcmp.eq.s32.totalorder %v1468_v61, 12 }
  0x2f   :  { %1146 = vmatpush3.msra.mxu1 %v243_v7 }
  0x30   :  { %1147 = vmatprep.subr.mxu1 %v242_v8 }
  0x31   :  { %1148 = vmatpush3.msra.mxu1 %v242_v8 }
  0x32   :  { %1149 = vmatprep.subr.mxu1 %v241_v9 }
  0x33   :  { %1150 = vmatpush3.msra.mxu1 %v241_v9 }
  0x34   :  { %1151 = vmatprep.subr.mxu1 %v240_v10 }
  0x35   :  { %1152 = vmatpush3.msra.mxu1 %v240_v10 }
  0x36   :  { %1153 = vmatprep.subr.mxu1 %v239_v11 }
  0x37   :  { %1154 = vmatpush3.msra.mxu1 %v239_v11 }
  0x38   :  { %1155 = vmatprep.subr.mxu1 %v238_v12 }
  0x39   :  { %1156 = vmatpush3.msra.mxu1 %v238_v12 }
  0x3a   :  { %1157 = vmatprep.subr.mxu1 %v237_v13 }
  0x3b   :  { %1158 = vmatpush3.msra.mxu1 %v237_v13 }
  0x3c   :  { %1159 = vmatprep.subr.mxu1 %v236_v14 }
  0x3d   :  { %1160 = vmatpush3.msra.mxu1 %v236_v14 }
  0xee   :  { %v1442_v16 = vpop.f32.mrf.mxu1 }
  0xef   :  { %173 = vst.msk [vmem:[#allocation2 + $0x18] sm:$0xff] %vm169_vm1, %v1442_v16 }
  0xf0   :  { %v1446_v17 = vpop.f32.mrf.mxu1 }
  0xf1   :  { %172 = vst.msk [vmem:[#allocation2 + $0x8] sm:$0xff] %vm169_vm1, %v1446_v17 }
  0xf6   :  { %v175_v21 = vld [vmem:[#allocation2 + $0x15] sm:$0xff] }
  0xf7   :  { %v186_v22 = vld [vmem:[#allocation2 + $0x16] sm:$0xff]  ;;  %v182_v24 = vmul.f32 %v1089_v18, %v175_v21 }
  0xf8   :  { %v197_v23 = vld [vmem:[#allocation2 + $0x17] sm:$0xff]  ;;  %v193_v25 = vmul.f32 %v1090_v19, %v186_v22  ;;  %v174_v28 = vld [vmem:[#allocation2 + $0x5] sm:$0xff] }
  0xf9   :  { %v208_v26 = vld [vmem:[#allocation2 + $0x18] sm:$0xff]  ;;  %v185_v29 = vld [vmem:[#allocation2 + $0x6] sm:$0xff]  ;;  %v204_v32 = vmul.f32 %v1091_v20, %v197_v23  ;;  %v181_v33 = vmul.f32 %v1089_v18, %v174_v28 }
  0xfa   :  { %v196_v30 = vld [vmem:[#allocation2 + $0x7] sm:$0xff]  ;;  %v195_v31 = vadd.f32 %v193_v25, %v182_v24  ;;  %v192_v34 = vmul.f32 %v1090_v19, %v185_v29  ;;  %v215_v37 = vmul.f32 %v1092_v27, %v208_v26 }
  0xfb   :  { %v207_v35 = vld [vmem:[#allocation2 + $0x8] sm:$0xff]  ;;  %v203_v39 = vmul.f32 %v1091_v20, %v196_v30 }
  0xfc   :  { %v206_v36 = vadd.f32 %v204_v32, %v195_v31  ;;  %v194_v38 = vadd.f32 %v192_v34, %v181_v33  ;;  %v214_v43 = vmul.f32 %v1092_v27, %v207_v35 }
  0xfe   :  { %v217_v41 = vadd.f32 %v215_v37, %v206_v36  ;;  %v205_v42 = vadd.f32 %v203_v39, %v194_v38  ;;  %v158_v36 = vsub.f32 0.0, %v1442_v16 }
 0x100   :  { %v223_v44 = vadd.f32 %v1093_v40, %v217_v41  ;;  %v216_v45 = vadd.f32 %v214_v43, %v205_v42  ;;  %v161_v41 = vmul.f32 1.442695, %v158_v36  ;;  %v979_v36 = vld [vmem:[%s1889_s5 + $0x8] sm:$0xff] }
 0x102   :  { %v225_v46 = vsub.f32 0.0, %v223_v44  ;;  %v222_v47 = vadd.f32 %v1093_v40, %v216_v45 }
 0x104   :  { %v228_v48 = vmul.f32 1.442695, %v225_v46  ;;  %v224_v49 = vsub.f32 0.0, %v222_v47 }
 0x106   :  { %v226_v50 = vmul.f32 1.442695, %v224_v49  ;;  %1198 = vpow2.f32 %v228_v48 }
 0x108   :  { %1200 = vpow2.f32 %v226_v50 }
 0x113   :  { %v1199_v51 = vpop.eup %1198 }
 0x114   :  { %v231_v53 = vadd.f32 1.0, %v1199_v51 }
 0x115   :  { %v1201_v52 = vpop.eup %1200 }
 0x116   :  { %v230_v54 = vadd.f32 1.0, %v1201_v52  ;;  %1202 = vrcp.f32 %v231_v53 }
 0x118   :  { %1204 = vrcp.f32 %v230_v54 }
 0x119   :  { %1206 = vpow2.f32 %v161_v41 }
 0x123   :  { %v1203_v55 = vpop.eup %1202 }
 0x124   :  { %v1450_v57 = vmul.f32 %v1203_v55, %v223_v44  ;;  %v157_v44 = vsub.f32 0.0, %v1446_v17 }
 0x125   :  { %v1205_v56 = vpop.eup %1204 }
 0x126   :  { %v1452_v58 = vmul.f32 %v1205_v56, %v222_v47  ;;  %1164 = vmatprep.subr.msk.mxu0 %vm169_vm1, %v1450_v57  ;;  %v159_v49 = vmul.f32 1.442695, %v157_v44 }
 0x127   :  { %1165 = vmatpush3.xpose.msk.msra.mxu0 %vm169_vm1, %v1450_v57 }
 0x128   :  { %1161 = vmatprep.mubr.msk.f32.mxu1 %vm169_vm1, %v1452_v58  ;;  %1166 = vmatprep.subr.msk.mxu0 %vm169_vm1, %v1452_v58  ;;  %1208 = vpow2.f32 %v159_v49 }
 0x129   :  { %1162 = vmatmul.mubr.msk.f32.vlgmr.msra.gmra.mxu1 %vm169_vm1, %v1450_v57 }
 0x12b   :  { %1167 = vmatpush3.xpose.msk.msra.mxu0 %vm169_vm1, %v1452_v58 }
 0x12e   :  { %1169 = vmatmul.mubr.msk.f32.vlgmr.msra.gmra.mxu0 %vm169_vm1, %v360_v59 }
 0x1ee   :  { %v1472_v62 = vpop.f32.mrf.mxu0 }
 0x1ef   :  { %v468_v63 = vsel %vm466_vm2, %v1472_v62, 0.0  ;;  %v446_v0 = vsel %vm444_vm3, %v1472_v62, 0.0  ;;  %v510_v3 = vsel %vm508_vm5, %v1472_v62, 0.0  ;;  %v489_v4 = vsel %vm487_vm6, %v1472_v62, 0.0 }
 0x1f0   :  { %v472_v1 = vsel %vm447_vm4, %v468_v63, 0.0  ;;  %v451_v2 = vsel %vm447_vm4, %v446_v0, 0.0  ;;  %v514_v5 = vsel %vm447_vm4, %v510_v3, 0.0  ;;  %v493_v6 = vsel %vm447_vm4, %v489_v4, 0.0  ;;  %v1530_v23 = vpop.f32.mrf.mxu0  ;;  %v1207_v3 = vpop.eup %1206 }
 0x1f1   :  { %473 = vadd.xlane.f32.xlu1 %v472_v1  ;;  %452 = vadd.xlane.f32.xlu0 %v451_v2  ;;  %v552_v7 = vsel %vm550_vm7, %v1472_v62, 0.0  ;;  %v531_v8 = vsel %vm529_vm8, %v1472_v62, 0.0  ;;  %v594_v11 = vsel %vm592_vm9, %v1472_v62, 0.0  ;;  %v573_v12 = vsel %vm571_vm10, %v1472_v62, 0.0 }
 0x1f2   :  { %v556_v9 = vsel %vm447_vm4, %v552_v7, 0.0  ;;  %v535_v10 = vsel %vm447_vm4, %v531_v8, 0.0  ;;  %v598_v13 = vsel %vm447_vm4, %v594_v11, 0.0  ;;  %v577_v14 = vsel %vm447_vm4, %v573_v12, 0.0  ;;  %v1209_v11 = vpop.eup %1208 }
 0x1f3   :  { %v636_v15 = vsel %vm634_vm11, %v1472_v62, 0.0  ;;  %v615_v18 = vsel %vm613_vm12, %v1472_v62, 0.0  ;;  %v678_v21 = vsel %vm676_vm13, %v1472_v62, 0.0  ;;  %v657_v22 = vsel %vm655_vm14, %v1472_v62, 0.0 }
 0x1f4   :  { %v640_v19 = vsel %vm447_vm4, %v636_v15, 0.0  ;;  %v619_v20 = vsel %vm447_vm4, %v615_v18, 0.0  ;;  %v682_v24 = vsel %vm447_vm4, %v678_v21, 0.0  ;;  %v661_v25 = vsel %vm447_vm4, %v657_v22, 0.0  ;;  %v1163_v15 = vpop.f32.mrf.mxu1  ;;  %v1094_v21 = vld [vmem:[#allocation9 + $0x5] ss:$0 sm:$0xff] }
 0x1f5   :  { %515 = vadd.xlane.f32.xlu1 %v514_v5  ;;  %494 = vadd.xlane.f32.xlu0 %v493_v6  ;;  %v467_v26 = vsel %vm466_vm2, %v1530_v23, 0.0  ;;  %v445_v27 = vsel %vm444_vm3, %v1530_v23, 0.0  ;;  %v635_v30 = vsel %vm634_vm11, %v1530_v23, 0.0  ;;  %v614_v31 = vsel %vm613_vm12, %v1530_v23, 0.0 }
 0x1f6   :  { %v469_v28 = vsel %vm447_vm4, %v467_v26, 0.0  ;;  %v448_v29 = vsel %vm447_vm4, %v445_v27, 0.0  ;;  %v637_v32 = vsel %vm447_vm4, %v635_v30, 0.0  ;;  %v616_v33 = vsel %vm447_vm4, %v614_v31, 0.0  ;;  %v982_v30 = vld [vmem:[%s1889_s5 + $0x20] sm:$0xff] }
 0x1f7   :  { %v656_v34 = vsel %vm655_vm14, %v1530_v23, 0.0  ;;  %v488_v35 = vsel %vm487_vm6, %v1530_v23, 0.0  ;;  %v677_v39 = vsel %vm676_vm13, %v1530_v23, 0.0  ;;  %v509_v40 = vsel %vm508_vm5, %v1530_v23, 0.0 }
 0x1f8   :  { %v658_v37 = vsel %vm447_vm4, %v656_v34, 0.0  ;;  %v490_v38 = vsel %vm447_vm4, %v488_v35, 0.0  ;;  %v679_v42 = vsel %vm447_vm4, %v677_v39, 0.0  ;;  %v511_v43 = vsel %vm447_vm4, %v509_v40, 0.0  ;;  %v980_v34 = vld [vmem:[%s1889_s5 + $0x10] sm:$0xff] }
 0x1f9   :  { %557 = vadd.xlane.f32.xlu1 %v556_v9  ;;  %536 = vadd.xlane.f32.xlu0 %v535_v10  ;;  %v698_v45 = vsel %vm697_vm15, %v1530_v23, 0.0  ;;  %v530_v46 = vsel %vm529_vm8, %v1530_v23, 0.0  ;;  %vm718_vm2 = vcmp.eq.s32.totalorder %v1468_v61, 13  ;;  %v551_v51 = vsel %vm550_vm7, %v1530_v23, 0.0 }
 0x1fa   :  { %v700_v47 = vsel %vm447_vm4, %v698_v45, 0.0  ;;  %v532_v48 = vsel %vm447_vm4, %v530_v46, 0.0  ;;  %v719_v50 = vsel %vm718_vm2, %v1530_v23, 0.0  ;;  %v553_v53 = vsel %vm447_vm4, %v551_v51, 0.0 }
 0x1fb   :  { %v721_v52 = vsel %vm447_vm4, %v719_v50, 0.0  ;;  %vm739_vm3 = vcmp.eq.s32.totalorder %v1468_v61, 14  ;;  %v572_v55 = vsel %vm571_vm10, %v1530_v23, 0.0  ;;  %v720_v63 = vsel %vm718_vm2, %v1472_v62, 0.0 }
 0x1fc   :  { %v740_v54 = vsel %vm739_vm3, %v1530_v23, 0.0  ;;  %v574_v59 = vsel %vm447_vm4, %v572_v55, 0.0  ;;  %v593_v0 = vsel %vm592_vm9, %v1530_v23, 0.0  ;;  %v724_v1 = vsel %vm447_vm4, %v720_v63, 0.0 }
 0x1fd   :  { %599 = vadd.xlane.f32.xlu1 %v598_v13  ;;  %578 = vadd.xlane.f32.xlu0 %v577_v14  ;;  %v742_v56 = vsel %vm447_vm4, %v740_v54, 0.0  ;;  %v595_v2 = vsel %vm447_vm4, %v593_v0, 0.0  ;;  %vm760_vm5 = vcmp.eq.s32.totalorder %v1468_v61, 15  ;;  %v699_v5 = vsel %vm697_vm15, %v1472_v62, 0.0  ;;  %v1655_v0 = vld [vmem:[#allocation9 + $0x7] sm:$0xff] }
 0x1fe   :  { %v761_v4 = vsel %vm760_vm5, %v1530_v23, 0.0  ;;  %v164_v6 = vadd.f32 1.0, %v1207_v3  ;;  %v703_v8 = vsel %vm447_vm4, %v699_v5, 0.0  ;;  %v762_v9 = vsel %vm760_vm5, %v1472_v62, 0.0 }
 0x1ff   :  { %v763_v7 = vsel %vm447_vm4, %v761_v4, 0.0  ;;  %v741_v10 = vsel %vm739_vm3, %v1472_v62, 0.0  ;;  %v766_v12 = vsel %vm447_vm4, %v762_v9, 0.0  ;;  %v163_v14 = vadd.f32 1.0, %v1209_v11 }
 0x200   :  { %1210 = vrcp.f32 %v164_v6  ;;  %v745_v13 = vsel %vm447_vm4, %v741_v10, 0.0  ;;  %v326_v61 = vadd.f32 %v1163_v15, %v1094_v21  ;;  %v455_v50 = vshrl.u32 %v442_v60, 7 }
 0x201   :  { %641 = vadd.xlane.f32.xlu1 %v640_v19  ;;  %620 = vadd.xlane.f32.xlu0 %v619_v20  ;;  %1212 = vrcp.f32 %v163_v14  ;;  %v320_v19 = vpop.f32.mrf.mxu1  ;;  %vm791_vm9 = vcmask 516096  }
 0x202   :  { %v321_v22 = vadd.f32 %v1094_v21, %v320_v19  ;;  %v1645_v54 = vsub.s32 0, %v455_v50  ;;  %vm330_vm8 = vcmp.gt.f32.partialorder %v326_v61, 20.0  ;;  %v1674_v11 = vsub.s32 3, %v455_v50 }
 0x204   :  { %vm329_vm7 = vcmp.gt.f32.partialorder %v321_v22, 20.0 }
 0x205   :  { %683 = vadd.xlane.f32.xlu1 %v682_v24  ;;  %662 = vadd.xlane.f32.xlu0 %v661_v25  ;;  %v331_v24 = vmin.f32 %v321_v22, 20.0  ;;  %v332_v25 = vmin.f32 %v326_v61, 20.0 }
 0x207   :  { %v333_v26 = vmul.f32 1.442695, %v331_v24  ;;  %v335_v27 = vmul.f32 1.442695, %v332_v25  ;;  %v1696_v25 = vsub.s32 5, %v455_v50 }
 0x209   :  { %470 = vadd.xlane.f32.xlu1 %v469_v28  ;;  %449 = vadd.xlane.f32.xlu0 %v448_v29  ;;  %1214 = vpow2.f32 %v333_v26  ;;  %v985_v28 = vld [vmem:[%s1889_s5 + $0x38] sm:$0xff] }
 0x20a   :  { %1216 = vpow2.f32 %v335_v27  ;;  %1171 = vmatprep.subr.mxu0 %v985_v28 }
 0x20b   :  { %1172 = vmatpush3.msra.mxu0 %v985_v28 }
 0x20d   :  { %638 = vadd.xlane.f32.xlu1 %v637_v32  ;;  %617 = vadd.xlane.f32.xlu0 %v616_v33  ;;  %v1211_v18 = vpop.eup %1210  ;;  %v981_v33 = vld [vmem:[%s1889_s5 + $0x18] sm:$0xff] }
 0x20e   :  { %v168_v20 = vmul.f32 %v1211_v18, %v1442_v16  ;;  %v1213_v23 = vpop.eup %1212  ;;  %v984_v16 = vld [vmem:[%s1889_s5 + $0x30] sm:$0xff]  ;;  %v1682_v18 = vsub.s32 4, %v455_v50 }
 0x20f   :  { %v167_v62 = vmul.f32 %v1213_v23, %v1446_v17  ;;  %v983_v17 = vld [vmem:[%s1889_s5 + $0x28] sm:$0xff]  ;;  %1173 = vmatprep.subr.mxu0 %v984_v16 }
 0x210   :  { %1174 = vmatpush3.msra.mxu0 %v984_v16 }
 0x211   :  { %659 = vadd.xlane.f32.xlu1 %v658_v37  ;;  %491 = vadd.xlane.f32.xlu0 %v490_v38  ;;  %v978_v37 = vld [vmem:[%s1889_s5] sm:$0xff]  ;;  %s1347_s5 = smov [#allocation10]  }
 0x212   :  { %1175 = vmatprep.subr.mxu0 %v983_v17  ;;  %s1074_s24 = sshll.u32 %s1347_s5, 4  ;;  %s1075_s24 = int_to_ptr.vmem [resolvable:$true] %s1074_s24 }
 0x213   :  { %1176 = vmatpush3.msra.mxu0 %v983_v17  ;;  %s1314_s25 = scalar_lea.vmem %s1075_s24, 256  ;;  %p1319_p2 = scmp.lt.s32.totalorder %s1075_s24, %s1075_s24 }
 0x214   :  { %1177 = vmatprep.subr.mxu0 %v982_v30  ;;  %p1315_p1 = scmp.ne.s32.totalorder %s1075_s24, %s1314_s25  ;;  %p1320_p3 = scmp.lt.s32.totalorder %s1314_s25, %s1314_s25 }
 0x215   :  { %680 = vadd.xlane.f32.xlu1 %v679_v42  ;;  %512 = vadd.xlane.f32.xlu0 %v511_v43 }
 0x216   :  { %v1215_v29 = vpop.eup %1214  ;;  %1178 = vmatpush3.msra.mxu0 %v982_v30  ;;  %p1321_p4 = por %p1320_p3, %p1319_p2 }
 0x217   :  { %v1217_v31 = vpop.eup %1216  ;;  %v337_v32 = vadd.f32 1.0, %v1215_v29  ;;  %1179 = vmatprep.subr.mxu0 %v981_v33  ;;  %v340_v38 = vmul.f32 -0.5, %v1215_v29  ;;  %v343_v42 = vand.u32 2147483647, %v1215_v29 }
 0x218   :  { %v346_v35 = vadd.f32 1.0, %v1217_v31  ;;  %1180 = vmatpush3.msra.mxu0 %v981_v33  ;;  %v349_v40 = vmul.f32 -0.5, %v1217_v31  ;;  %v352_v46 = vand.u32 2147483647, %v1217_v31  ;;  %p1322_p5 = pnand %p1321_p4, %p1315_p1 }
 0x219   :  { %701 = vadd.xlane.f32.xlu1 %v700_v47  ;;  %533 = vadd.xlane.f32.xlu0 %v532_v48  ;;  %1218 = vlog2.f32 %v337_v32  ;;  %v341_v41 = vadd.f32 1.0, %v340_v38  ;;  %vm344_vm4 = vcmp.lt.f32.partialorder %v343_v42, 0.0004427343 }
 0x21a   :  { %1181 = vmatprep.subr.mxu0 %v980_v34  ;;  %1220 = vlog2.f32 %v346_v35  ;;  %v350_v45 = vadd.f32 1.0, %v349_v40  ;;  %vm353_vm6 = vcmp.lt.f32.partialorder %v352_v46, 0.0004427343  ;;  %v1726_v40 = vsub.s32 7, %v455_v50 }
 0x21b   :  { %1182 = vmatpush3.msra.mxu0 %v980_v34  ;;  %v342_v47 = vmul.f32 %v1215_v29, %v341_v41  ;;  %v1711_v29 = vsub.s32 6, %v455_v50 }
 0x21c   :  { %1183 = vmatprep.subr.mxu0 %v979_v36  ;;  %v351_v51 = vmul.f32 %v1217_v31, %v350_v45 }
 0x21d   :  { %722 = vadd.xlane.f32.xlu1 %v721_v52  ;;  %554 = vadd.xlane.f32.xlu0 %v553_v53 }
 0x21e   :  { %1184 = vmatpush3.msra.mxu0 %v979_v36 }
 0x21f   :  { %1185 = vmatprep.subr.mxu0 %v978_v37 }
 0x220   :  { %1186 = vmatpush3.msra.mxu0 %v978_v37 }
 0x221   :  { %743 = vadd.xlane.f32.xlu1 %v742_v56  ;;  %575 = vadd.xlane.f32.xlu0 %v574_v59 }
 0x225   :  { %725 = vadd.xlane.f32.xlu1 %v724_v1  ;;  %596 = vadd.xlane.f32.xlu0 %v595_v2  ;;  %v1659_v1 = vsub.s32 1, %v455_v50 }
 0x226   :  { %v1219_v39 = vpop.eup %1218 }
 0x227   :  { %v1221_v43 = vpop.eup %1220  ;;  %v339_v44 = vmul.f32 0.6931472, %v1219_v39 }
 0x228   :  { %v348_v48 = vmul.f32 0.6931472, %v1221_v43 }
 0x229   :  { %764 = vadd.xlane.f32.xlu1 %v763_v7  ;;  %704 = vadd.xlane.f32.xlu0 %v703_v8  ;;  %v345_v49 = vsel %vm344_vm4, %v342_v47, %v339_v44  ;;  %v1669_v8 = vsub.s32 2, %v455_v50 }
 0x22a   :  { %v354_v52 = vsel %vm353_vm6, %v351_v51, %v348_v48  ;;  %v1643_v53 = vsel %vm329_vm7, %v321_v22, %v345_v49 }
 0x22b   :  { %v1647_v55 = vsel %vm330_vm8, %v326_v61, %v354_v52  ;;  %v457_v56 = vrot.slane %v1643_v53, %v1645_v54  ;;  %v478_v3 = vrot.slane %v1643_v53, %v1659_v1  ;;  %v499_v15 = vrot.slane %v1643_v53, %v1669_v8 }
 0x22c   :  { %v625_v60 = vrot.slane %v1647_v55, %v1645_v54  ;;  %v646_v9 = vrot.slane %v1647_v55, %v1659_v1  ;;  %v667_v19 = vrot.slane %v1647_v55, %v1669_v8  ;;  %v688_v22 = vrot.slane %v1647_v55, %v1674_v11 }
 0x22d   :  { %767 = vadd.xlane.f32.xlu1 %v766_v12  ;;  %746 = vadd.xlane.f32.xlu0 %v745_v13  ;;  %v458_v2 = vmul.f32 %v457_v56, %v1655_v0  ;;  %v479_v10 = vmul.f32 %v478_v3, %v1655_v0  ;;  %v520_v24 = vrot.slane %v1643_v53, %v1674_v11 }
 0x22e   :  { %v626_v6 = vmul.f32 %v625_v60, %v1655_v0  ;;  %v647_v21 = vmul.f32 %v646_v9, %v1655_v0  ;;  %v1700_v26 = vmul.f32 %v1647_v55, %v1450_v57  ;;  %v709_v27 = vrot.slane %v1647_v55, %v1682_v18 }
 0x22f   :  { %v459_v7 = vmul.f32 1.442695, %v458_v2  ;;  %v1706_v28 = vmul.f32 %v1643_v53, %v1452_v58  ;;  %v668_v16 = vmul.f32 %v667_v19, %v1655_v0  ;;  %v541_v17 = vrot.slane %v1643_v53, %v1682_v18 }
 0x230   :  { %v627_v14 = vmul.f32 1.442695, %v626_v6  ;;  %v648_v30 = vmul.f32 1.442695, %v647_v21  ;;  %v689_v31 = vmul.f32 %v688_v22, %v1655_v0  ;;  %v562_v32 = vrot.slane %v1643_v53, %v1696_v25 }
 0x231   :  { %1222 = vpow2.f32 %v459_v7  ;;  %v521_v36 = vmul.f32 %v520_v24, %v1655_v0  ;;  %v730_v37 = vrot.slane %v1647_v55, %v1696_v25  ;;  %v653_v38 = vrot.slane %v1700_v26, %v1659_v1 }
 0x232   :  { %1224 = vpow2.f32 %v627_v14  ;;  %v710_v39 = vmul.f32 %v709_v27, %v1655_v0  ;;  %v632_v41 = vrot.slane %v1700_v26, %v1645_v54  ;;  %v669_v42 = vmul.f32 1.442695, %v668_v16 }
 0x233   :  { %v542_v43 = vmul.f32 %v541_v17, %v1655_v0  ;;  %v751_v44 = vrot.slane %v1647_v55, %v1711_v29  ;;  %v485_v45 = vrot.slane %v1706_v28, %v1659_v1  ;;  %v690_v46 = vmul.f32 1.442695, %v689_v31 }
 0x234   :  { %v563_v47 = vmul.f32 %v562_v32, %v1655_v0  ;;  %v522_v50 = vmul.f32 1.442695, %v521_v36  ;;  %v731_v51 = vmul.f32 %v730_v37, %v1655_v0  ;;  %v583_v52 = vrot.slane %v1643_v53, %v1711_v29 }
 0x235   :  { %v464_v56 = vrot.slane %v1706_v28, %v1645_v54  ;;  %v674_v60 = vrot.slane %v1700_v26, %v1669_v8  ;;  %v506_v2 = vrot.slane %v1706_v28, %v1669_v8  ;;  %v711_v3 = vmul.f32 1.442695, %v710_v39 }
 0x236   :  { %v543_v7 = vmul.f32 1.442695, %v542_v43  ;;  %v752_v9 = vmul.f32 %v751_v44, %v1655_v0  ;;  %v695_v14 = vrot.slane %v1700_v26, %v1674_v11  ;;  %v564_v54 = vmul.f32 1.442695, %v563_v47 }
 0x237   :  { %v527_v21 = vrot.slane %v1706_v28, %v1674_v11  ;;  %v732_v22 = vmul.f32 1.442695, %v731_v51  ;;  %v716_v16 = vrot.slane %v1700_v26, %v1682_v18  ;;  %v737_v32 = vrot.slane %v1700_v26, %v1696_v25 }
 0x238   :  { %v753_v17 = vmul.f32 1.442695, %v752_v9  ;;  %v569_v43 = vrot.slane %v1706_v28, %v1696_v25 }
 0x23e   :  { %972 = vrot.lane.b32.xlu1 %v168_v20, %s1346_s2  ;;  %v480_v20 = vmul.f32 1.442695, %v479_v10  ;;  %v1223_v6 = vpop.eup %1222  ;;  %v604_v10 = vrot.slane %v1643_v53, %v1726_v40 }
 0x23f   :  { %v1225_v24 = vpop.eup %1224  ;;  %v781_v53 = vmul.f32 0.0, %v1223_v6 }
 0x240   :  { %1226 = vpow2.f32 %v480_v20 }
 0x241   :  { %1228 = vpow2.f32 %v648_v30  ;;  %v605_v30 = vmul.f32 %v604_v10, %v1655_v0 }
 0x243   :  { %970 = vrot.lane.b32.xlu0 %v167_v62, %s1346_s2  ;;  %v500_v62 = vmul.f32 %v499_v15, %v1655_v0  ;;  %v772_v15 = vrot.slane %v1647_v55, %v1726_v40  ;;  %v548_v55 = vrot.slane %v1706_v28, %v1682_v18 }
 0x245   :  { %v501_v35 = vmul.f32 1.442695, %v500_v62  ;;  %v584_v62 = vmul.f32 %v583_v52, %v1655_v0  ;;  %v758_v52 = vrot.slane %v1700_v26, %v1711_v29 }
 0x247   :  { %1230 = vpow2.f32 %v501_v35  ;;  %v773_v35 = vmul.f32 %v772_v15, %v1655_v0  ;;  %v585_v44 = vmul.f32 1.442695, %v584_v62  ;;  %v590_v0 = vrot.slane %v1706_v28, %v1711_v29 }
 0x248   :  { %1232 = vpow2.f32 %v669_v42  ;;  %v870_v42 = vmul.f32 0.0, %v1225_v24 }
 0x249   :  { %1234 = vpow2.f32 %v690_v46  ;;  %v774_v9 = vmul.f32 1.442695, %v773_v35 }
 0x24a   :  { %1236 = vpow2.f32 %v522_v50 }
 0x24b   :  { %1238 = vpow2.f32 %v711_v3 }
 0x24c   :  { %1240 = vpow2.f32 %v543_v7 }
 0x24d   :  { %1242 = vpow2.f32 %v564_v54  ;;  %v1227_v36 = vpop.eup %1226 }
 0x24e   :  { %1244 = vpow2.f32 %v732_v22  ;;  %v1229_v10 = vpop.eup %1228 }
 0x24f   :  { %1246 = vpow2.f32 %v753_v17 }
 0x250   :  { %1248 = vpow2.f32 %v585_v44 }
 0x27a   :  { %v1651_v59 = vpop.xlane.xlu1 %473  ;;  %v1653_v63 = vpop.xlane.xlu0 %452 }
 0x27e   :  { %v1664_v4 = vpop.xlane.xlu1 %515  ;;  %v1666_v5 = vpop.xlane.xlu0 %494 }
 0x282   :  { %v1676_v12 = vpop.xlane.xlu1 %557  ;;  %v1678_v13 = vpop.xlane.xlu0 %536 }
 0x286   :  { %v1689_v23 = vpop.xlane.xlu1 %599  ;;  %v1691_v61 = vpop.xlane.xlu0 %578 }
 0x28a   :  { %v1716_v33 = vpop.xlane.xlu1 %641  ;;  %v1718_v34 = vpop.xlane.xlu0 %620 }
 0x28e   :  { %v1736_v48 = vpop.xlane.xlu1 %683  ;;  %v1738_v49 = vpop.xlane.xlu0 %662 }
 0x292   :  { %v471_v19 = vpop.xlane.xlu1 %470  ;;  %v450_v20 = vpop.xlane.xlu0 %449 }
 0x293   :  { %v465_v27 = vmul.f32 %v464_v56, %v450_v20  ;;  %v486_v46 = vmul.f32 %v485_v45, %v471_v19  ;;  %v606_v56 = vmul.f32 1.442695, %v605_v30  ;;  %v1231_v19 = vpop.eup %1230 }
 0x294   :  { %v1233_v30 = vpop.eup %1232 }
 0x295   :  { %v782_v31 = vadd.f32 %v781_v53, %v465_v27  ;;  %1250 = vpow2.f32 %v606_v56  ;;  %v1235_v1 = vpop.eup %1234 }
 0x296   :  { %v639_v37 = vpop.xlane.xlu1 %638  ;;  %v618_v39 = vpop.xlane.xlu0 %617  ;;  %1252 = vpow2.f32 %v774_v9 }
 0x297   :  { %v783_v47 = vmul.f32 %v782_v31, %v1653_v63  ;;  %v793_v50 = vmul.f32 %v1227_v36, %v782_v31  ;;  %v633_v51 = vmul.f32 %v632_v41, %v618_v39  ;;  %v611_v63 = vrot.slane %v1706_v28, %v1726_v40 }
 0x298   :  { %v779_v41 = vrot.slane %v1700_v26, %v1726_v40  ;;  %v654_v20 = vmul.f32 %v653_v38, %v639_v37 }
 0x299   :  { %v784_v3 = vsel %vm169_vm1, %v783_v47, 0.0  ;;  %v871_v6 = vadd.f32 %v870_v42, %v633_v51  ;;  %v794_v7 = vadd.f32 %v793_v50, %v486_v46 }
 0x29a   :  { %v785_v54 = vrot.slane %v784_v3, 4  ;;  %v660_v45 = vpop.xlane.xlu1 %659  ;;  %v492_v15 = vpop.xlane.xlu0 %491 }
 0x29b   :  { %v872_v22 = vmul.f32 %v871_v6, %v1718_v34  ;;  %v881_v62 = vmul.f32 %v1229_v10, %v871_v6  ;;  %v507_v24 = vmul.f32 %v506_v2, %v492_v15  ;;  %v795_v53 = vmul.f32 %v794_v7, %v1651_v59  ;;  %v1237_v59 = vpop.eup %1236 }
 0x29c   :  { %v786_v27 = vadd.f32 %v785_v54, %v784_v3  ;;  %v804_v17 = vmul.f32 %v1231_v19, %v794_v7  ;;  %v675_v35 = vmul.f32 %v674_v60, %v660_v45  ;;  %v1239_v60 = vpop.eup %1238 }
 0x29d   :  { %v873_v31 = vsel %vm169_vm1, %v872_v22, 0.0  ;;  %v882_v36 = vadd.f32 %v881_v62, %v654_v20  ;;  %v796_v34 = vsel %vm169_vm1, %v795_v53, 0.0  ;;  %v1241_v6 = vpop.eup %1240 }
 0x29e   :  { %v787_v38 = vrot.slane %v786_v27, 2  ;;  %v874_v37 = vrot.slane %v873_v31, 4  ;;  %v805_v2 = vadd.f32 %v804_v17, %v507_v24  ;;  %v681_v39 = vpop.xlane.xlu1 %680  ;;  %v513_v42 = vpop.xlane.xlu0 %512  ;;  %v797_v47 = vrot.slane %v796_v34, 4 }
 0x29f   :  { %v883_v44 = vmul.f32 %v882_v36, %v1716_v33  ;;  %v892_v46 = vmul.f32 %v1233_v30, %v882_v36  ;;  %v696_v8 = vmul.f32 %v695_v14, %v681_v39  ;;  %v528_v3 = vmul.f32 %v527_v21, %v513_v42  ;;  %v1798_v54 = vpop.eup %1242 }
 0x2a0   :  { %v788_v50 = vadd.f32 %v787_v38, %v786_v27  ;;  %v875_v51 = vadd.f32 %v874_v37, %v873_v31  ;;  %v806_v56 = vmul.f32 %v805_v2, %v1666_v5  ;;  %v798_v33 = vadd.f32 %v797_v47, %v796_v34  ;;  %v1245_v5 = vpop.eup %1244 }
 0x2a1   :  { %v884_v7 = vsel %vm169_vm1, %v883_v44, 0.0  ;;  %v893_v9 = vadd.f32 %v892_v46, %v675_v35  ;;  %v815_v10 = vmul.f32 %v1237_v59, %v805_v2  ;;  %v1802_v31 = vpop.eup %1246 }
 0x2a2   :  { %v789_v45 = vrot.slane %v788_v50, 1  ;;  %v876_v15 = vrot.slane %v875_v51, 2  ;;  %v885_v14 = vrot.slane %v884_v7, 4  ;;  %v807_v19 = vsel %vm169_vm1, %v806_v56, 0.0  ;;  %v702_v20 = vpop.xlane.xlu1 %701  ;;  %v534_v22 = vpop.xlane.xlu0 %533 }
 0x2a3   :  { %v894_v62 = vmul.f32 %v893_v9, %v1738_v49  ;;  %v799_v11 = vrot.slane %v798_v33, 2  ;;  %v808_v21 = vrot.slane %v807_v19, 4  ;;  %v903_v24 = vmul.f32 %v1235_v1, %v893_v9  ;;  %v1807_v59 = vpop.eup %1248 }
 0x2a4   :  { %v790_v27 = vadd.f32 %v789_v45, %v788_v50  ;;  %v877_v53 = vadd.f32 %v876_v15, %v875_v51  ;;  %v886_v17 = vadd.f32 %v885_v14, %v884_v7  ;;  %v816_v30 = vadd.f32 %v815_v10, %v528_v3  ;;  %v1814_v7 = vpop.eup %1250 }
 0x2a5   :  { %v895_v35 = vsel %vm169_vm1, %v894_v62, 0.0  ;;  %v800_v36 = vadd.f32 %v799_v11, %v798_v33  ;;  %v809_v38 = vadd.f32 %v808_v21, %v807_v19  ;;  %v904_v37 = vadd.f32 %v903_v24, %v696_v8  ;;  %v1817_v45 = vpop.eup %1252 }
 0x2a6   :  { %792 = vst.msk [vmem:[#allocation3] sm:$0x1] %vm791_vm9, %v790_v27  ;;  %v878_v34 = vrot.slane %v877_v53, 1  ;;  %v887_v2 = vrot.slane %v886_v17, 2  ;;  %v896_v39 = vrot.slane %v895_v35, 4  ;;  %v817_v49 = vmul.f32 %v816_v30, %v1664_v4  ;;  %v723_v42 = vpop.xlane.xlu1 %722  ;;  %v555_v1 = vpop.xlane.xlu0 %554 }
 0x2a7   :  { %v801_v44 = vrot.slane %v800_v36, 1  ;;  %v810_v46 = vrot.slane %v809_v38, 2  ;;  %v905_v47 = vmul.f32 %v904_v37, %v1736_v48  ;;  %v717_v50 = vmul.f32 %v716_v16, %v702_v20 }
 0x2a8   :  { %v879_v8 = vadd.f32 %v878_v34, %v877_v53  ;;  %v888_v51 = vadd.f32 %v887_v2, %v886_v17  ;;  %v897_v56 = vadd.f32 %v896_v39, %v895_v35  ;;  %v818_v3 = vsel %vm169_vm1, %v817_v49, 0.0 }
 0x2a9   :  { %v802_v4 = vadd.f32 %v801_v44, %v800_v36  ;;  %v811_v9 = vadd.f32 %v810_v46, %v809_v38  ;;  %v906_v33 = vsel %vm169_vm1, %v905_v47, 0.0  ;;  %v819_v10 = vrot.slane %v818_v3, 4 }
 0x2aa   :  { %880 = vst.msk [vmem:[#allocation3 + $0x8] sm:$0x1] %vm791_vm9, %v879_v8  ;;  %v889_v48 = vrot.slane %v888_v51, 1  ;;  %v898_v15 = vrot.slane %v897_v56, 2  ;;  %v907_v14 = vrot.slane %v906_v33, 4  ;;  %v914_v16 = vmul.f32 %v1239_v60, %v904_v37  ;;  %v744_v19 = vpop.xlane.xlu1 %743  ;;  %v576_v20 = vpop.xlane.xlu0 %575 }
 0x2ab   :  { %803 = vst.msk [vmem:[#allocation3 + $0x1] sm:$0x1] %vm791_vm9, %v802_v4  ;;  %v812_v62 = vrot.slane %v811_v9, 1  ;;  %v820_v11 = vadd.f32 %v819_v10, %v818_v3  ;;  %v549_v21 = vmul.f32 %v548_v55, %v534_v22  ;;  %v826_v24 = vmul.f32 %v1241_v6, %v816_v30 }
 0x2ac   :  { %v890_v27 = vadd.f32 %v889_v48, %v888_v51  ;;  %v899_v53 = vadd.f32 %v898_v15, %v897_v56  ;;  %v908_v17 = vadd.f32 %v907_v14, %v906_v33  ;;  %v915_v35 = vadd.f32 %v914_v16, %v717_v50 }
 0x2ad   :  { %v813_v36 = vadd.f32 %v812_v62, %v811_v9  ;;  %v821_v38 = vrot.slane %v820_v11, 2  ;;  %v827_v34 = vadd.f32 %v826_v24, %v549_v21  ;;  %v738_v60 = vmul.f32 %v737_v32, %v723_v42 }
 0x2ae   :  { %891 = vst.msk [vmem:[#allocation3 + $0x9] sm:$0x1] %vm791_vm9, %v890_v27  ;;  %v900_v37 = vrot.slane %v899_v53, 1  ;;  %v909_v2 = vrot.slane %v908_v17, 2  ;;  %v925_v39 = vmul.f32 %v1245_v5, %v915_v35  ;;  %v570_v18 = vmul.f32 %v569_v43, %v555_v1  ;;  %v726_v55 = vpop.xlane.xlu1 %725  ;;  %v597_v6 = vpop.xlane.xlu0 %596 }
 0x2af   :  { %814 = vst.msk [vmem:[#allocation3 + $0x2] sm:$0x1] %vm791_vm9, %v813_v36  ;;  %v822_v22 = vadd.f32 %v821_v38, %v820_v11  ;;  %v828_v30 = vmul.f32 %v827_v34, %v1678_v13  ;;  %v837_v49 = vmul.f32 %v1798_v54, %v827_v34  ;;  %v759_v32 = vmul.f32 %v758_v52, %v744_v19 }
 0x2b0   :  { %v901_v42 = vadd.f32 %v900_v37, %v899_v53  ;;  %v910_v44 = vadd.f32 %v909_v2, %v908_v17  ;;  %v926_v5 = vadd.f32 %v925_v39, %v738_v60  ;;  %v591_v25 = vmul.f32 %v590_v0, %v576_v20 }
 0x2b1   :  { %v823_v43 = vrot.slane %v822_v22, 1  ;;  %v829_v1 = vsel %vm169_vm1, %v828_v30, 0.0  ;;  %v838_v46 = vadd.f32 %v837_v49, %v570_v18  ;;  %v612_v13 = vmul.f32 %v611_v63, %v597_v6 }
 0x2b2   :  { %902 = vst.msk [vmem:[#allocation3 + $0xa] sm:$0x1] %vm791_vm9, %v901_v42  ;;  %v911_v54 = vrot.slane %v910_v44, 1  ;;  %v830_v47 = vrot.slane %v829_v1, 4  ;;  %v936_v52 = vmul.f32 %v1802_v31, %v926_v5  ;;  %v927_v50 = vmul.f32 %v926_v5, %v726_v55  ;;  %v765_v8 = vpop.xlane.xlu1 %764  ;;  %v705_v51 = vpop.xlane.xlu0 %704 }
 0x2b3   :  { %v824_v56 = vadd.f32 %v823_v43, %v822_v22  ;;  %v839_v29 = vmul.f32 %v838_v46, %v1676_v12  ;;  %v848_v0 = vmul.f32 %v1807_v59, %v838_v46  ;;  %v780_v3 = vmul.f32 %v779_v41, %v765_v8 }
 0x2b4   :  { %v912_v28 = vadd.f32 %v911_v54, %v910_v44  ;;  %v831_v63 = vadd.f32 %v830_v47, %v829_v1  ;;  %v937_v4 = vadd.f32 %v936_v52, %v759_v32  ;;  %v928_v9 = vsel %vm169_vm1, %v927_v50, 0.0 }
 0x2b5   :  { %825 = vst.msk [vmem:[#allocation3 + $0x3] sm:$0x1] %vm791_vm9, %v824_v56  ;;  %v840_v31 = vsel %vm169_vm1, %v839_v29, 0.0  ;;  %v849_v33 = vadd.f32 %v848_v0, %v591_v25  ;;  %v929_v10 = vrot.slane %v928_v9, 4  ;;  %v916_v48 = vmul.f32 %v915_v35, %v705_v51 }
 0x2b6   :  { %913 = vst.msk [vmem:[#allocation3 + $0xb] sm:$0x1] %vm791_vm9, %v912_v28  ;;  %v832_v12 = vrot.slane %v831_v63, 2  ;;  %v841_v59 = vrot.slane %v840_v31, 4  ;;  %v947_v15 = vmul.f32 %v1817_v45, %v937_v4  ;;  %v747_v26 = vpop.xlane.xlu0 %746  ;;  %v768_v11 = vpop.xlane.xlu1 %767 }
 0x2b7   :  { %v850_v40 = vmul.f32 %v849_v33, %v1691_v61  ;;  %v930_v41 = vadd.f32 %v929_v10, %v928_v9  ;;  %v859_v14 = vmul.f32 %v1814_v7, %v849_v33  ;;  %v917_v16 = vsel %vm169_vm1, %v916_v48, 0.0  ;;  %v1101_v10 = vld [vmem:[#allocation9 + $0x6] ss:$0 sm:$0xff] }
 0x2b8   :  { %v833_v19 = vadd.f32 %v832_v12, %v831_v63  ;;  %v842_v20 = vadd.f32 %v841_v59, %v840_v31  ;;  %v918_v62 = vrot.slane %v917_v16, 4  ;;  %v948_v21 = vadd.f32 %v947_v15, %v780_v3 }
 0x2b9   :  { %v851_v24 = vsel %vm169_vm1, %v850_v40, 0.0  ;;  %v931_v27 = vrot.slane %v930_v41, 2  ;;  %v860_v53 = vadd.f32 %v859_v14, %v612_v13  ;;  %v938_v17 = vmul.f32 %v937_v4, %v747_v26 }
 0x2ba   :  { %v834_v35 = vrot.slane %v833_v19, 1  ;;  %v843_v45 = vrot.slane %v842_v20, 2  ;;  %v852_v36 = vrot.slane %v851_v24, 4  ;;  %v919_v38 = vadd.f32 %v918_v62, %v917_v16  ;;  %v973_v14 = vpop.permute.xlu1 %972 }
 0x2bb   :  { %v932_v61 = vadd.f32 %v931_v27, %v930_v41  ;;  %v861_v34 = vmul.f32 %v860_v53, %v1689_v23  ;;  %v949_v7 = vmul.f32 %v948_v21, %v768_v11  ;;  %v939_v60 = vsel %vm169_vm1, %v938_v17, 0.0  ;;  %v971_v41 = vpop.permute.xlu0 %970 }
 0x2bc   :  { %v835_v37 = vadd.f32 %v834_v35, %v833_v19  ;;  %v844_v2 = vadd.f32 %v843_v45, %v842_v20  ;;  %v853_v39 = vadd.f32 %v852_v36, %v851_v24  ;;  %v920_v18 = vrot.slane %v919_v38, 2 }
 0x2bd   :  { %v933_v55 = vrot.slane %v932_v61, 1  ;;  %v862_v6 = vsel %vm169_vm1, %v861_v34, 0.0  ;;  %v950_v22 = vsel %vm169_vm1, %v949_v7, 0.0  ;;  %v940_v30 = vrot.slane %v939_v60, 4 }
 0x2be   :  { %836 = vst.msk [vmem:[#allocation3 + $0x4] sm:$0x1] %vm791_vm9, %v835_v37  ;;  %v845_v49 = vrot.slane %v844_v2, 1  ;;  %v854_v32 = vrot.slane %v853_v39, 2  ;;  %v863_v42 = vrot.slane %v862_v6, 4  ;;  %v921_v44 = vadd.f32 %v920_v18, %v919_v38 }
 0x2bf   :  { %v934_v23 = vadd.f32 %v933_v55, %v932_v61  ;;  %v951_v5 = vrot.slane %v950_v22, 4  ;;  %v941_v25 = vadd.f32 %v940_v30, %v939_v60  ;;  %v964_v48 = vmul.f32 %v1101_v10, %v1452_v58 }
 0x2c0   :  { %v846_v43 = vadd.f32 %v845_v49, %v844_v2  ;;  %v855_v1 = vadd.f32 %v854_v32, %v853_v39  ;;  %v864_v46 = vadd.f32 %v863_v42, %v862_v6  ;;  %v922_v13 = vrot.slane %v921_v44, 1 }
 0x2c1   :  { %935 = vst.msk [vmem:[#allocation3 + $0xd] sm:$0x1] %vm791_vm9, %v934_v23  ;;  %v952_v54 = vadd.f32 %v951_v5, %v950_v22  ;;  %v942_v47 = vrot.slane %v941_v25, 2  ;;  %v965_v12 = vmul.f32 %v1101_v10, %v1450_v57 }
 0x2c2   :  { %847 = vst.msk [vmem:[#allocation3 + $0x5] sm:$0x1] %vm791_vm9, %v846_v43  ;;  %v856_v52 = vrot.slane %v855_v1, 1  ;;  %v865_v50 = vrot.slane %v864_v46, 2  ;;  %v923_v8 = vadd.f32 %v922_v13, %v921_v44 }
 0x2c3   :  { %v953_v51 = vrot.slane %v952_v54, 2  ;;  %v943_v56 = vadd.f32 %v942_v47, %v941_v25 }
 0x2c4   :  { %v857_v29 = vadd.f32 %v856_v52, %v855_v1  ;;  %v866_v0 = vadd.f32 %v865_v50, %v864_v46  ;;  %924 = vst.msk [vmem:[#allocation3 + $0xc] sm:$0x1] %vm791_vm9, %v923_v8 }
 0x2c5   :  { %v954_v3 = vadd.f32 %v953_v51, %v952_v54  ;;  %v944_v28 = vrot.slane %v943_v56, 1 }
 0x2c6   :  { %858 = vst.msk [vmem:[#allocation3 + $0x6] sm:$0x1] %vm791_vm9, %v857_v29  ;;  %v867_v63 = vrot.slane %v866_v0, 1 }
 0x2c7   :  { %v955_v4 = vrot.slane %v954_v3, 1  ;;  %v945_v9 = vadd.f32 %v944_v28, %v943_v56 }
 0x2c8   :  { %v868_v31 = vadd.f32 %v867_v63, %v866_v0 }
 0x2c9   :  { %v956_v33 = vadd.f32 %v955_v4, %v954_v3  ;;  %946 = vst.msk [vmem:[#allocation3 + $0xe] sm:$0x1] %vm791_vm9, %v945_v9 }
 0x2ca   :  { %869 = vst.msk [vmem:[#allocation3 + $0x7] sm:$0x1] %vm791_vm9, %v868_v31 }
 0x2cb   :  { %957 = vst.msk [vmem:[#allocation3 + $0xf] sm:$0x1] %vm791_vm9, %v956_v33 }
 0x2d1   :  { %v958_v59 = vld [vmem:[#allocation3] sm:$0xff] }
 0x2d2   :  { %v959_v15 = vld [vmem:[#allocation3 + $0x8] sm:$0xff]  ;;  %v966_v26 = vadd.f32 %v964_v48, %v958_v59 }
 0x2d3   :  { %v967_v40 = vadd.f32 %v965_v12, %v959_v15 }
 0x2d4   :  { %v976_v16 = vmul.f32 %v971_v41, %v966_v26 }
 0x2d5   :  { %v977_v19 = vmul.f32 %v973_v14, %v967_v40 }
 0x2d6   :  { %1187 = vmatprep.mubr.msk.f32.mxu0 %vm169_vm1, %v976_v16 }
 0x2d7   :  { %1188 = vmatmul.mubr.msk.f32.vlgmr.msra.gmra.mxu0 %vm169_vm1, %v977_v19 }
 0x397   :  { %v1189_v20 = vpop.f32.mrf.mxu0 }
 0x398   :  { %1068 = vst.msk [vmem:[#allocation10 + $0x8] sm:$0xff] %vm75_vm0, %v1189_v20 }
 0x399   :  { %v1058_v58 = vpop.f32.mrf.mxu0 }
 0x39a   :  { %1067 = vst.msk [vmem:[#allocation10] sm:$0xff] %vm75_vm0, %v1058_v58 }
 0x39b   :  { %1325 = shalt.err (!%p1322_p5)
}
 0x39c   :  { %1080 = dma.vmem_to_hbm [thread:$0]  %s1075_s24, 256, %s1890_s6, [#allocation6], %s1342_s26, %s1342_s26, %s1343_s27  }
 0x39d   :  { %1338 = dma.done.wait [#allocation6], 256  }
 0x39e   :  { %1339 = vsyncadd [#allocation6], 4294967040 }
 0x39f   :  { %1084 = vsyncpa [#allocation5], 1 }
 0x3a0   :  { %1085 = vsyncpa [#allocation8], 1 }
 0x3a1   :  { %1086 = vsyncpa [#allocation6], 1 }

</bundles_post_ra>
